<compile_context>
chip_gen: v6e
topology: v6e:2x2x1
jax: 0.10.0
libtpu: 0.0.40
codegen_flags: <defaults>
</compile_context>

<pallas_src>
import functools

import jax
import jax.numpy as jnp
from jax.experimental import pallas as pl
from jax.experimental.pallas import tpu as pltpu

NEG_SLOPE = 0.2


# ----------------------------- fused Pallas kernel ---------------------------
def _gat_fused_kernel(x_ref, adj_ref, *refs, layer_cfg, out_ch):
    """refs = (w_cat, asrc_mat, bias) x num_layers, then the output ref."""
    o_ref = refs[-1]
    w_refs = refs[:-1]

    adj = adj_ref[...]                                   # [N, N]
    # Additive softmax mask + zero-in-degree guard, built ONCE for all
    # layers / heads (hoisted out of the inner loops).
    mask_bias = jnp.where(adj > 0, 0.0, -1e30)           # [N, N]
    deg = jnp.sum(adj, axis=1, keepdims=True)            # [N, 1]
    row_mask = (deg > 0).astype(jnp.float32)             # isolated rows -> 0

    def layer(h, w_ref, asrc_ref, b_ref, heads, relu):
        hc = heads * out_ch
        # Single projection matmul: produces messages xs AND the folded
        # att_dst reduction a_dst in one MXU pass.
        proj = jnp.dot(h, w_ref[...], preferred_element_type=jnp.float32)
        xs = proj[:, :hc]                                # [N, H*C]
        a_dst = proj[:, hc:hc + heads]                   # [N, H]
        # a_srcT[h, n] = sum_c att_src[h, c] * xs[n, h*C + c]
        # (contract xs's last axis directly -> no xs.T materialization).
        a_srcT = jax.lax.dot_general(
            asrc_ref[...], xs, (((1,), (1,)), ((), ())),
            preferred_element_type=jnp.float32)          # [H, N]

        head_outs = []
        for hh in range(heads):
            # e[i, j] = leaky_relu(a_dst[i, h] + a_src[j, h]), masked by adj.
            e = a_dst[:, hh:hh + 1] + a_srcT[hh:hh + 1, :]      # [N, N]
            e = jnp.where(e > 0, e, NEG_SLOPE * e)
            e = e + mask_bias
            m = jnp.max(e, axis=1, keepdims=True)
            p = jnp.exp(e - m)                                  # EUP
            denom = jnp.sum(p, axis=1, keepdims=True)
            inv = pl.reciprocal(jnp.maximum(denom, 1e-30), approx=True)
            attn = p * (inv * row_mask)                         # [N, N]
            # aggregate: out_h[i] = sum_j attn[i, j] * xs[j, head hh]
            head_outs.append(
                jnp.dot(attn, xs[:, hh * out_ch:(hh + 1) * out_ch],
                        preferred_element_type=jnp.float32))    # [N, C]
        out = head_outs[0] if heads == 1 else jnp.concatenate(head_outs, axis=1)
        out = out + b_ref[...]
        return jnp.maximum(out, 0.0) if relu else out

    h = x_ref[...]
    for li, (heads, relu) in enumerate(layer_cfg):
        w_ref, a_ref, b_ref = w_refs[3 * li:3 * li + 3]
        h = layer(h, w_ref, a_ref, b_ref, heads, relu)
    o_ref[...] = h                                        # single full store


def gat_forward(x, adj, prepared_layers, *, out_ch):
    """Run the whole 4-layer GAT as one Pallas kernel (graph held in VMEM).

    prepared_layers: tuple of (w_cat, asrc_mat, bias, heads, relu) per layer.
    """
    n = x.shape[0]
    flat_inputs = []
    layer_cfg = []
    for (w_cat, asrc_mat, bias, heads, relu) in prepared_layers:
        flat_inputs += [w_cat, asrc_mat, bias]
        layer_cfg.append((int(heads), bool(relu)))
    out_width = prepared_layers[-1][3] * out_ch

    kernel = functools.partial(_gat_fused_kernel,
                               layer_cfg=tuple(layer_cfg), out_ch=out_ch)
    vmem = pl.BlockSpec(memory_space=pltpu.MemorySpace.VMEM)
    # TODO(synk): for large N, switch to a row-tiled grid (parallel axis) with
    # online softmax and a bf16/int8 adjacency to fit v7x's 64 MiB VMEM.
    return pl.pallas_call(
        kernel,
        out_shape=jax.ShapeDtypeStruct((n, out_width), jnp.float32),
        in_specs=[vmem] * (2 + len(flat_inputs)),
        out_specs=vmem,
    )(x, adj, *flat_inputs)


# ------------------------------ parameter init -------------------------------
def init_gat_conv_params(key, in_ch, out_ch, heads):
    kw1, kw2, ka1, ka2, kb = jax.random.split(key, 5)
    hc = heads * out_ch
    w_src = jax.random.normal(kw1, (in_ch, hc), jnp.float32) / jnp.sqrt(in_ch)
    w_dst = jax.random.normal(kw2, (in_ch, hc), jnp.float32) / jnp.sqrt(in_ch)
    att_src = jax.random.normal(ka1, (heads, out_ch), jnp.float32) / jnp.sqrt(out_ch)
    att_dst = jax.random.normal(ka2, (heads, out_ch), jnp.float32) / jnp.sqrt(out_ch)
    bias = 0.1 * jax.random.normal(kb, (1, hc), jnp.float32)
    return w_src, w_dst, att_src, att_dst, bias


def prepare_layer(params, *, heads, out_ch, relu):
    """Fold attention vectors into dense matmul operands (done once, in JAX)."""
    w_src, w_dst, att_src, att_dst, bias = params
    hc = heads * out_ch
    asrc_mat = jnp.zeros((heads, hc), jnp.float32)   # [H, H*C] block-diag
    adst_mat = jnp.zeros((hc, heads), jnp.float32)   # [H*C, H] block-diag
    for h in range(heads):
        asrc_mat = asrc_mat.at[h, h * out_ch:(h + 1) * out_ch].set(att_src[h])
        adst_mat = adst_mat.at[h * out_ch:(h + 1) * out_ch, h].set(att_dst[h])
    # a_dst = x @ (W_dst @ Adst): append those columns to W_src so one matmul
    # produces [xs | a_dst].
    w_cat = jnp.concatenate([w_src, jnp.dot(w_dst, adst_mat)], axis=1)
    return (w_cat, asrc_mat, bias, heads, relu)


# ----------------------- pure-JAX edge-list reference ------------------------
def gat_conv_ref(x, edge_index, params, *, heads, out_ch, apply_relu, n):
    w_src, w_dst, att_src, att_dst, bias = params
    hc = heads * out_ch
    hp = jax.lax.Precision.HIGHEST
    xs = jnp.dot(x, w_src, precision=hp).reshape(n, heads, out_ch)
    xd = jnp.dot(x, w_dst, precision=hp).reshape(n, heads, out_ch)
    a_src = jnp.sum(xs * att_src[None], axis=-1)     # [N, H]
    a_dst = jnp.sum(xd * att_dst[None], axis=-1)     # [N, H]
    src, dst = edge_index[0], edge_index[1]
    alpha = a_src[src] + a_dst[dst]                  # [E, H]
    alpha = jnp.where(alpha > 0, alpha, NEG_SLOPE * alpha)
    amax = jax.ops.segment_max(alpha, dst, num_segments=n)[dst]
    ex = jnp.exp(alpha - amax)
    denom = jax.ops.segment_sum(ex, dst, num_segments=n)[dst]
    attn = ex / denom
    msg = xs[src] * attn[:, :, None]
    out = jax.ops.segment_sum(msg, dst, num_segments=n).reshape(n, hc) + bias[0]
    return jnp.maximum(out, 0.0) if apply_relu else out


# ---------------------------------- main --------------------------------------
if __name__ == "__main__":
    key = jax.random.PRNGKey(0)
    N, FIN, HIDDEN, HEADS = 16, 8, 32, 2

    k_x, k1, k2, k3, k4 = jax.random.split(key, 5)
    x = jax.random.normal(k_x, (N, FIN), jnp.float32)

    # Bidirectional ring graph: every node has in-degree 2 (no multi-edges;
    # the dense-adjacency form collapses duplicates, matching simple graphs).
    idx = jnp.arange(N)
    src = jnp.concatenate([idx, (idx + 1) % N])
    dst = jnp.concatenate([(idx + 1) % N, idx])
    edge_index = jnp.stack([src, dst]).astype(jnp.int32)
    adj = jnp.zeros((N, N), jnp.float32).at[dst, src].set(1.0)

    p1 = init_gat_conv_params(k1, FIN, HIDDEN, HEADS)
    p2 = init_gat_conv_params(k2, HIDDEN * HEADS, HIDDEN, HEADS)
    p3 = init_gat_conv_params(k3, HIDDEN * HEADS, HIDDEN, HEADS)
    p4 = init_gat_conv_params(k4, HIDDEN * HEADS, HIDDEN, 1)

    prepared = (
        prepare_layer(p1, heads=HEADS, out_ch=HIDDEN, relu=True),
        prepare_layer(p2, heads=HEADS, out_ch=HIDDEN, relu=True),
        prepare_layer(p3, heads=HEADS, out_ch=HIDDEN, relu=True),
        prepare_layer(p4, heads=1, out_ch=HIDDEN, relu=False),
    )

    out = gat_forward(x, adj, prepared, out_ch=HIDDEN)
    out = jax.block_until_ready(out)
    assert out.shape == (N, HIDDEN)

    # Correctness check against an edge-list (PyG-style) reference.
    ref = x
    for p, h, r in [(p1, HEADS, True), (p2, HEADS, True),
                    (p3, HEADS, True), (p4, 1, False)]:
        ref = gat_conv_ref(ref, edge_index, p, heads=h, out_ch=HIDDEN,
                           apply_relu=r, n=N)
    assert jnp.allclose(out, ref, atol=1e-2, rtol=1e-2), (
        float(jnp.max(jnp.abs(out - ref))))

    print("KERNEL_OK")
</pallas_src>

<mosaic_0001>
module attributes {stable_mosaic.version = 11 : i64} {
  func.func @_gat_fused_kernel(%arg0: memref<16x8xf32, #tpu.memory_space<vmem>>, %arg1: memref<16x16xf32, #tpu.memory_space<vmem>>, %arg2: memref<8x66xf32, #tpu.memory_space<vmem>>, %arg3: memref<2x64xf32, #tpu.memory_space<vmem>>, %arg4: memref<1x64xf32, #tpu.memory_space<vmem>>, %arg5: memref<64x66xf32, #tpu.memory_space<vmem>>, %arg6: memref<2x64xf32, #tpu.memory_space<vmem>>, %arg7: memref<1x64xf32, #tpu.memory_space<vmem>>, %arg8: memref<64x66xf32, #tpu.memory_space<vmem>>, %arg9: memref<2x64xf32, #tpu.memory_space<vmem>>, %arg10: memref<1x64xf32, #tpu.memory_space<vmem>>, %arg11: memref<64x33xf32, #tpu.memory_space<vmem>>, %arg12: memref<1x32xf32, #tpu.memory_space<vmem>>, %arg13: memref<1x32xf32, #tpu.memory_space<vmem>>, %arg14: memref<16x32xf32, #tpu.memory_space<vmem>>) attributes {dimension_semantics = [], scalar_prefetch = 0 : i64, scratch_operands = 0 : i64, tpu.core_type = #tpu.core_type<tc>} {
    %c0 = arith.constant 0 : index
    %c0_0 = arith.constant 0 : index
    %0 = vector.load %arg1[%c0, %c0_0] : memref<16x16xf32, #tpu.memory_space<vmem>>, vector<16x16xf32>
    %cst = arith.constant 0.000000e+00 : f32
    %1 = vector.broadcast %cst : f32 to vector<16x16xf32>
    %2 = arith.cmpf ogt, %0, %1 : vector<16x16xf32>
    %cst_1 = arith.constant 0.000000e+00 : f32
    %cst_2 = arith.constant -1.000000e+30 : f32
    %3 = vector.broadcast %cst_1 : f32 to vector<16x16xf32>
    %4 = vector.broadcast %cst_2 : f32 to vector<16x16xf32>
    %5 = arith.select %2, %3, %4 : vector<16x16xi1>, vector<16x16xf32>
    %cst_3 = arith.constant dense<0.000000e+00> : vector<16xf32>
    %6 = vector.multi_reduction <add>, %0, %cst_3 [1] : vector<16x16xf32> to vector<16xf32>
    %7 = vector.shape_cast %6 : vector<16xf32> to vector<16x1xf32>
    %cst_4 = arith.constant 0.000000e+00 : f32
    %8 = vector.broadcast %cst_4 : f32 to vector<16x1xf32>
    %9 = arith.cmpf ogt, %7, %8 : vector<16x1xf32>
    %10 = arith.extui %9 : vector<16x1xi1> to vector<16x1xi32>
    %11 = arith.sitofp %10 : vector<16x1xi32> to vector<16x1xf32>
    %c0_5 = arith.constant 0 : index
    %c0_6 = arith.constant 0 : index
    %12 = vector.load %arg0[%c0_5, %c0_6] : memref<16x8xf32, #tpu.memory_space<vmem>>, vector<16x8xf32>
    %c0_7 = arith.constant 0 : index
    %c0_8 = arith.constant 0 : index
    %13 = vector.load %arg2[%c0_7, %c0_8] : memref<8x66xf32, #tpu.memory_space<vmem>>, vector<8x66xf32>
    %cst_9 = arith.constant dense<0.000000e+00> : vector<16x66xf32>
    %14 = tpu.matmul %12, %13, %cst_9 {dimension_numbers = #tpu.dot_dimension_numbers<[1], [0], [0], [1], [0, 0, 1, 1], [], []>} : vector<16x8xf32>, vector<8x66xf32>, vector<16x66xf32> -> vector<16x66xf32>
    %15 = vector.extract_strided_slice %14 {offsets = [0, 0], sizes = [16, 64], strides = [1, 1]} : vector<16x66xf32> to vector<16x64xf32>
    %16 = vector.extract_strided_slice %14 {offsets = [0, 64], sizes = [16, 2], strides = [1, 1]} : vector<16x66xf32> to vector<16x2xf32>
    %c0_10 = arith.constant 0 : index
    %c0_11 = arith.constant 0 : index
    %17 = vector.load %arg3[%c0_10, %c0_11] : memref<2x64xf32, #tpu.memory_space<vmem>>, vector<2x64xf32>
    %cst_12 = arith.constant dense<0.000000e+00> : vector<2x16xf32>
    %18 = tpu.matmul %17, %15, %cst_12 {dimension_numbers = #tpu.dot_dimension_numbers<[1], [1], [0], [0], [0, 0, 1, 0], [], []>} : vector<2x64xf32>, vector<16x64xf32>, vector<2x16xf32> -> vector<2x16xf32>
    %19 = vector.extract_strided_slice %16 {offsets = [0, 0], sizes = [16, 1], strides = [1, 1]} : vector<16x2xf32> to vector<16x1xf32>
    %20 = vector.extract_strided_slice %18 {offsets = [0, 0], sizes = [1, 16], strides = [1, 1]} : vector<2x16xf32> to vector<1x16xf32>
    %21 = vector.broadcast %19 : vector<16x1xf32> to vector<16x16xf32>
    %22 = vector.broadcast %20 : vector<1x16xf32> to vector<16x16xf32>
    %23 = arith.addf %21, %22 : vector<16x16xf32>
    %cst_13 = arith.constant 0.000000e+00 : f32
    %24 = vector.broadcast %cst_13 : f32 to vector<16x16xf32>
    %25 = arith.cmpf ogt, %23, %24 : vector<16x16xf32>
    %cst_14 = arith.constant 2.000000e-01 : f32
    %26 = vector.broadcast %cst_14 : f32 to vector<16x16xf32>
    %27 = arith.mulf %26, %23 : vector<16x16xf32>
    %28 = arith.select %25, %23, %27 : vector<16x16xi1>, vector<16x16xf32>
    %29 = arith.addf %28, %5 : vector<16x16xf32>
    %cst_15 = arith.constant dense<0xFF800000> : vector<16xf32>
    %30 = vector.multi_reduction <maximumf>, %29, %cst_15 [1] : vector<16x16xf32> to vector<16xf32>
    %31 = vector.shape_cast %30 : vector<16xf32> to vector<16x1xf32>
    %32 = vector.broadcast %31 : vector<16x1xf32> to vector<16x16xf32>
    %33 = arith.subf %29, %32 : vector<16x16xf32>
    %34 = math.exp %33 : vector<16x16xf32>
    %cst_16 = arith.constant dense<0.000000e+00> : vector<16xf32>
    %35 = vector.multi_reduction <add>, %34, %cst_16 [1] : vector<16x16xf32> to vector<16xf32>
    %36 = vector.shape_cast %35 : vector<16xf32> to vector<16x1xf32>
    %cst_17 = arith.constant 1.000000e-30 : f32
    %37 = vector.broadcast %cst_17 : f32 to vector<16x1xf32>
    %38 = arith.maximumf %36, %37 : vector<16x1xf32>
    %39 = tpu.reciprocal %38 {approx = true} : vector<16x1xf32> -> vector<16x1xf32>
    %40 = arith.mulf %39, %11 : vector<16x1xf32>
    %41 = vector.broadcast %40 : vector<16x1xf32> to vector<16x16xf32>
    %42 = arith.mulf %34, %41 : vector<16x16xf32>
    %43 = vector.extract_strided_slice %15 {offsets = [0, 0], sizes = [16, 32], strides = [1, 1]} : vector<16x64xf32> to vector<16x32xf32>
    %cst_18 = arith.constant dense<0.000000e+00> : vector<16x32xf32>
    %44 = tpu.matmul %42, %43, %cst_18 {dimension_numbers = #tpu.dot_dimension_numbers<[1], [0], [0], [1], [0, 0, 1, 1], [], []>} : vector<16x16xf32>, vector<16x32xf32>, vector<16x32xf32> -> vector<16x32xf32>
    %45 = vector.extract_strided_slice %16 {offsets = [0, 1], sizes = [16, 1], strides = [1, 1]} : vector<16x2xf32> to vector<16x1xf32>
    %46 = vector.extract_strided_slice %18 {offsets = [1, 0], sizes = [1, 16], strides = [1, 1]} : vector<2x16xf32> to vector<1x16xf32>
    %47 = vector.broadcast %45 : vector<16x1xf32> to vector<16x16xf32>
    %48 = vector.broadcast %46 : vector<1x16xf32> to vector<16x16xf32>
    %49 = arith.addf %47, %48 : vector<16x16xf32>
    %cst_19 = arith.constant 0.000000e+00 : f32
    %50 = vector.broadcast %cst_19 : f32 to vector<16x16xf32>
    %51 = arith.cmpf ogt, %49, %50 : vector<16x16xf32>
    %cst_20 = arith.constant 2.000000e-01 : f32
    %52 = vector.broadcast %cst_20 : f32 to vector<16x16xf32>
    %53 = arith.mulf %52, %49 : vector<16x16xf32>
    %54 = arith.select %51, %49, %53 : vector<16x16xi1>, vector<16x16xf32>
    %55 = arith.addf %54, %5 : vector<16x16xf32>
    %cst_21 = arith.constant dense<0xFF800000> : vector<16xf32>
    %56 = vector.multi_reduction <maximumf>, %55, %cst_21 [1] : vector<16x16xf32> to vector<16xf32>
    %57 = vector.shape_cast %56 : vector<16xf32> to vector<16x1xf32>
    %58 = vector.broadcast %57 : vector<16x1xf32> to vector<16x16xf32>
    %59 = arith.subf %55, %58 : vector<16x16xf32>
    %60 = math.exp %59 : vector<16x16xf32>
    %cst_22 = arith.constant dense<0.000000e+00> : vector<16xf32>
    %61 = vector.multi_reduction <add>, %60, %cst_22 [1] : vector<16x16xf32> to vector<16xf32>
    %62 = vector.shape_cast %61 : vector<16xf32> to vector<16x1xf32>
    %cst_23 = arith.constant 1.000000e-30 : f32
    %63 = vector.broadcast %cst_23 : f32 to vector<16x1xf32>
    %64 = arith.maximumf %62, %63 : vector<16x1xf32>
    %65 = tpu.reciprocal %64 {approx = true} : vector<16x1xf32> -> vector<16x1xf32>
    %66 = arith.mulf %65, %11 : vector<16x1xf32>
    %67 = vector.broadcast %66 : vector<16x1xf32> to vector<16x16xf32>
    %68 = arith.mulf %60, %67 : vector<16x16xf32>
    %69 = vector.extract_strided_slice %15 {offsets = [0, 32], sizes = [16, 32], strides = [1, 1]} : vector<16x64xf32> to vector<16x32xf32>
    %cst_24 = arith.constant dense<0.000000e+00> : vector<16x32xf32>
    %70 = tpu.matmul %68, %69, %cst_24 {dimension_numbers = #tpu.dot_dimension_numbers<[1], [0], [0], [1], [0, 0, 1, 1], [], []>} : vector<16x16xf32>, vector<16x32xf32>, vector<16x32xf32> -> vector<16x32xf32>
    %71 = tpu.concatenate %44, %70 in 1 : vector<16x32xf32>, vector<16x32xf32> -> vector<16x64xf32>
    %c0_25 = arith.constant 0 : index
    %c0_26 = arith.constant 0 : index
    %72 = vector.load %arg4[%c0_25, %c0_26] : memref<1x64xf32, #tpu.memory_space<vmem>>, vector<1x64xf32>
    %73 = vector.broadcast %72 : vector<1x64xf32> to vector<16x64xf32>
    %74 = arith.addf %71, %73 : vector<16x64xf32>
    %cst_27 = arith.constant 0.000000e+00 : f32
    %75 = vector.broadcast %cst_27 : f32 to vector<16x64xf32>
    %76 = arith.maximumf %74, %75 : vector<16x64xf32>
    %c0_28 = arith.constant 0 : index
    %c0_29 = arith.constant 0 : index
    %77 = vector.load %arg5[%c0_28, %c0_29] : memref<64x66xf32, #tpu.memory_space<vmem>>, vector<64x66xf32>
    %cst_30 = arith.constant dense<0.000000e+00> : vector<16x66xf32>
    %78 = tpu.matmul %76, %77, %cst_30 {dimension_numbers = #tpu.dot_dimension_numbers<[1], [0], [0], [1], [0, 0, 1, 1], [], []>} : vector<16x64xf32>, vector<64x66xf32>, vector<16x66xf32> -> vector<16x66xf32>
    %79 = vector.extract_strided_slice %78 {offsets = [0, 0], sizes = [16, 64], strides = [1, 1]} : vector<16x66xf32> to vector<16x64xf32>
    %80 = vector.extract_strided_slice %78 {offsets = [0, 64], sizes = [16, 2], strides = [1, 1]} : vector<16x66xf32> to vector<16x2xf32>
    %c0_31 = arith.constant 0 : index
    %c0_32 = arith.constant 0 : index
    %81 = vector.load %arg6[%c0_31, %c0_32] : memref<2x64xf32, #tpu.memory_space<vmem>>, vector<2x64xf32>
    %cst_33 = arith.constant dense<0.000000e+00> : vector<2x16xf32>
    %82 = tpu.matmul %81, %79, %cst_33 {dimension_numbers = #tpu.dot_dimension_numbers<[1], [1], [0], [0], [0, 0, 1, 0], [], []>} : vector<2x64xf32>, vector<16x64xf32>, vector<2x16xf32> -> vector<2x16xf32>
    %83 = vector.extract_strided_slice %80 {offsets = [0, 0], sizes = [16, 1], strides = [1, 1]} : vector<16x2xf32> to vector<16x1xf32>
    %84 = vector.extract_strided_slice %82 {offsets = [0, 0], sizes = [1, 16], strides = [1, 1]} : vector<2x16xf32> to vector<1x16xf32>
    %85 = vector.broadcast %83 : vector<16x1xf32> to vector<16x16xf32>
    %86 = vector.broadcast %84 : vector<1x16xf32> to vector<16x16xf32>
    %87 = arith.addf %85, %86 : vector<16x16xf32>
    %cst_34 = arith.constant 0.000000e+00 : f32
    %88 = vector.broadcast %cst_34 : f32 to vector<16x16xf32>
    %89 = arith.cmpf ogt, %87, %88 : vector<16x16xf32>
    %cst_35 = arith.constant 2.000000e-01 : f32
    %90 = vector.broadcast %cst_35 : f32 to vector<16x16xf32>
    %91 = arith.mulf %90, %87 : vector<16x16xf32>
    %92 = arith.select %89, %87, %91 : vector<16x16xi1>, vector<16x16xf32>
    %93 = arith.addf %92, %5 : vector<16x16xf32>
    %cst_36 = arith.constant dense<0xFF800000> : vector<16xf32>
    %94 = vector.multi_reduction <maximumf>, %93, %cst_36 [1] : vector<16x16xf32> to vector<16xf32>
    %95 = vector.shape_cast %94 : vector<16xf32> to vector<16x1xf32>
    %96 = vector.broadcast %95 : vector<16x1xf32> to vector<16x16xf32>
    %97 = arith.subf %93, %96 : vector<16x16xf32>
    %98 = math.exp %97 : vector<16x16xf32>
    %cst_37 = arith.constant dense<0.000000e+00> : vector<16xf32>
    %99 = vector.multi_reduction <add>, %98, %cst_37 [1] : vector<16x16xf32> to vector<16xf32>
    %100 = vector.shape_cast %99 : vector<16xf32> to vector<16x1xf32>
    %cst_38 = arith.constant 1.000000e-30 : f32
    %101 = vector.broadcast %cst_38 : f32 to vector<16x1xf32>
    %102 = arith.maximumf %100, %101 : vector<16x1xf32>
    %103 = tpu.reciprocal %102 {approx = true} : vector<16x1xf32> -> vector<16x1xf32>
    %104 = arith.mulf %103, %11 : vector<16x1xf32>
    %105 = vector.broadcast %104 : vector<16x1xf32> to vector<16x16xf32>
    %106 = arith.mulf %98, %105 : vector<16x16xf32>
    %107 = vector.extract_strided_slice %79 {offsets = [0, 0], sizes = [16, 32], strides = [1, 1]} : vector<16x64xf32> to vector<16x32xf32>
    %cst_39 = arith.constant dense<0.000000e+00> : vector<16x32xf32>
    %108 = tpu.matmul %106, %107, %cst_39 {dimension_numbers = #tpu.dot_dimension_numbers<[1], [0], [0], [1], [0, 0, 1, 1], [], []>} : vector<16x16xf32>, vector<16x32xf32>, vector<16x32xf32> -> vector<16x32xf32>
    %109 = vector.extract_strided_slice %80 {offsets = [0, 1], sizes = [16, 1], strides = [1, 1]} : vector<16x2xf32> to vector<16x1xf32>
    %110 = vector.extract_strided_slice %82 {offsets = [1, 0], sizes = [1, 16], strides = [1, 1]} : vector<2x16xf32> to vector<1x16xf32>
    %111 = vector.broadcast %109 : vector<16x1xf32> to vector<16x16xf32>
    %112 = vector.broadcast %110 : vector<1x16xf32> to vector<16x16xf32>
    %113 = arith.addf %111, %112 : vector<16x16xf32>
    %cst_40 = arith.constant 0.000000e+00 : f32
    %114 = vector.broadcast %cst_40 : f32 to vector<16x16xf32>
    %115 = arith.cmpf ogt, %113, %114 : vector<16x16xf32>
    %cst_41 = arith.constant 2.000000e-01 : f32
    %116 = vector.broadcast %cst_41 : f32 to vector<16x16xf32>
    %117 = arith.mulf %116, %113 : vector<16x16xf32>
    %118 = arith.select %115, %113, %117 : vector<16x16xi1>, vector<16x16xf32>
    %119 = arith.addf %118, %5 : vector<16x16xf32>
    %cst_42 = arith.constant dense<0xFF800000> : vector<16xf32>
    %120 = vector.multi_reduction <maximumf>, %119, %cst_42 [1] : vector<16x16xf32> to vector<16xf32>
    %121 = vector.shape_cast %120 : vector<16xf32> to vector<16x1xf32>
    %122 = vector.broadcast %121 : vector<16x1xf32> to vector<16x16xf32>
    %123 = arith.subf %119, %122 : vector<16x16xf32>
    %124 = math.exp %123 : vector<16x16xf32>
    %cst_43 = arith.constant dense<0.000000e+00> : vector<16xf32>
    %125 = vector.multi_reduction <add>, %124, %cst_43 [1] : vector<16x16xf32> to vector<16xf32>
    %126 = vector.shape_cast %125 : vector<16xf32> to vector<16x1xf32>
    %cst_44 = arith.constant 1.000000e-30 : f32
    %127 = vector.broadcast %cst_44 : f32 to vector<16x1xf32>
    %128 = arith.maximumf %126, %127 : vector<16x1xf32>
    %129 = tpu.reciprocal %128 {approx = true} : vector<16x1xf32> -> vector<16x1xf32>
    %130 = arith.mulf %129, %11 : vector<16x1xf32>
    %131 = vector.broadcast %130 : vector<16x1xf32> to vector<16x16xf32>
    %132 = arith.mulf %124, %131 : vector<16x16xf32>
    %133 = vector.extract_strided_slice %79 {offsets = [0, 32], sizes = [16, 32], strides = [1, 1]} : vector<16x64xf32> to vector<16x32xf32>
    %cst_45 = arith.constant dense<0.000000e+00> : vector<16x32xf32>
    %134 = tpu.matmul %132, %133, %cst_45 {dimension_numbers = #tpu.dot_dimension_numbers<[1], [0], [0], [1], [0, 0, 1, 1], [], []>} : vector<16x16xf32>, vector<16x32xf32>, vector<16x32xf32> -> vector<16x32xf32>
    %135 = tpu.concatenate %108, %134 in 1 : vector<16x32xf32>, vector<16x32xf32> -> vector<16x64xf32>
    %c0_46 = arith.constant 0 : index
    %c0_47 = arith.constant 0 : index
    %136 = vector.load %arg7[%c0_46, %c0_47] : memref<1x64xf32, #tpu.memory_space<vmem>>, vector<1x64xf32>
    %137 = vector.broadcast %136 : vector<1x64xf32> to vector<16x64xf32>
    %138 = arith.addf %135, %137 : vector<16x64xf32>
    %cst_48 = arith.constant 0.000000e+00 : f32
    %139 = vector.broadcast %cst_48 : f32 to vector<16x64xf32>
    %140 = arith.maximumf %138, %139 : vector<16x64xf32>
    %c0_49 = arith.constant 0 : index
    %c0_50 = arith.constant 0 : index
    %141 = vector.load %arg8[%c0_49, %c0_50] : memref<64x66xf32, #tpu.memory_space<vmem>>, vector<64x66xf32>
    %cst_51 = arith.constant dense<0.000000e+00> : vector<16x66xf32>
    %142 = tpu.matmul %140, %141, %cst_51 {dimension_numbers = #tpu.dot_dimension_numbers<[1], [0], [0], [1], [0, 0, 1, 1], [], []>} : vector<16x64xf32>, vector<64x66xf32>, vector<16x66xf32> -> vector<16x66xf32>
    %143 = vector.extract_strided_slice %142 {offsets = [0, 0], sizes = [16, 64], strides = [1, 1]} : vector<16x66xf32> to vector<16x64xf32>
    %144 = vector.extract_strided_slice %142 {offsets = [0, 64], sizes = [16, 2], strides = [1, 1]} : vector<16x66xf32> to vector<16x2xf32>
    %c0_52 = arith.constant 0 : index
    %c0_53 = arith.constant 0 : index
    %145 = vector.load %arg9[%c0_52, %c0_53] : memref<2x64xf32, #tpu.memory_space<vmem>>, vector<2x64xf32>
    %cst_54 = arith.constant dense<0.000000e+00> : vector<2x16xf32>
    %146 = tpu.matmul %145, %143, %cst_54 {dimension_numbers = #tpu.dot_dimension_numbers<[1], [1], [0], [0], [0, 0, 1, 0], [], []>} : vector<2x64xf32>, vector<16x64xf32>, vector<2x16xf32> -> vector<2x16xf32>
    %147 = vector.extract_strided_slice %144 {offsets = [0, 0], sizes = [16, 1], strides = [1, 1]} : vector<16x2xf32> to vector<16x1xf32>
    %148 = vector.extract_strided_slice %146 {offsets = [0, 0], sizes = [1, 16], strides = [1, 1]} : vector<2x16xf32> to vector<1x16xf32>
    %149 = vector.broadcast %147 : vector<16x1xf32> to vector<16x16xf32>
    %150 = vector.broadcast %148 : vector<1x16xf32> to vector<16x16xf32>
    %151 = arith.addf %149, %150 : vector<16x16xf32>
    %cst_55 = arith.constant 0.000000e+00 : f32
    %152 = vector.broadcast %cst_55 : f32 to vector<16x16xf32>
    %153 = arith.cmpf ogt, %151, %152 : vector<16x16xf32>
    %cst_56 = arith.constant 2.000000e-01 : f32
    %154 = vector.broadcast %cst_56 : f32 to vector<16x16xf32>
    %155 = arith.mulf %154, %151 : vector<16x16xf32>
    %156 = arith.select %153, %151, %155 : vector<16x16xi1>, vector<16x16xf32>
    %157 = arith.addf %156, %5 : vector<16x16xf32>
    %cst_57 = arith.constant dense<0xFF800000> : vector<16xf32>
    %158 = vector.multi_reduction <maximumf>, %157, %cst_57 [1] : vector<16x16xf32> to vector<16xf32>
    %159 = vector.shape_cast %158 : vector<16xf32> to vector<16x1xf32>
    %160 = vector.broadcast %159 : vector<16x1xf32> to vector<16x16xf32>
    %161 = arith.subf %157, %160 : vector<16x16xf32>
    %162 = math.exp %161 : vector<16x16xf32>
    %cst_58 = arith.constant dense<0.000000e+00> : vector<16xf32>
    %163 = vector.multi_reduction <add>, %162, %cst_58 [1] : vector<16x16xf32> to vector<16xf32>
    %164 = vector.shape_cast %163 : vector<16xf32> to vector<16x1xf32>
    %cst_59 = arith.constant 1.000000e-30 : f32
    %165 = vector.broadcast %cst_59 : f32 to vector<16x1xf32>
    %166 = arith.maximumf %164, %165 : vector<16x1xf32>
    %167 = tpu.reciprocal %166 {approx = true} : vector<16x1xf32> -> vector<16x1xf32>
    %168 = arith.mulf %167, %11 : vector<16x1xf32>
    %169 = vector.broadcast %168 : vector<16x1xf32> to vector<16x16xf32>
    %170 = arith.mulf %162, %169 : vector<16x16xf32>
    %171 = vector.extract_strided_slice %143 {offsets = [0, 0], sizes = [16, 32], strides = [1, 1]} : vector<16x64xf32> to vector<16x32xf32>
    %cst_60 = arith.constant dense<0.000000e+00> : vector<16x32xf32>
    %172 = tpu.matmul %170, %171, %cst_60 {dimension_numbers = #tpu.dot_dimension_numbers<[1], [0], [0], [1], [0, 0, 1, 1], [], []>} : vector<16x16xf32>, vector<16x32xf32>, vector<16x32xf32> -> vector<16x32xf32>
    %173 = vector.extract_strided_slice %144 {offsets = [0, 1], sizes = [16, 1], strides = [1, 1]} : vector<16x2xf32> to vector<16x1xf32>
    %174 = vector.extract_strided_slice %146 {offsets = [1, 0], sizes = [1, 16], strides = [1, 1]} : vector<2x16xf32> to vector<1x16xf32>
    %175 = vector.broadcast %173 : vector<16x1xf32> to vector<16x16xf32>
    %176 = vector.broadcast %174 : vector<1x16xf32> to vector<16x16xf32>
    %177 = arith.addf %175, %176 : vector<16x16xf32>
    %cst_61 = arith.constant 0.000000e+00 : f32
    %178 = vector.broadcast %cst_61 : f32 to vector<16x16xf32>
    %179 = arith.cmpf ogt, %177, %178 : vector<16x16xf32>
    %cst_62 = arith.constant 2.000000e-01 : f32
    %180 = vector.broadcast %cst_62 : f32 to vector<16x16xf32>
    %181 = arith.mulf %180, %177 : vector<16x16xf32>
    %182 = arith.select %179, %177, %181 : vector<16x16xi1>, vector<16x16xf32>
    %183 = arith.addf %182, %5 : vector<16x16xf32>
    %cst_63 = arith.constant dense<0xFF800000> : vector<16xf32>
    %184 = vector.multi_reduction <maximumf>, %183, %cst_63 [1] : vector<16x16xf32> to vector<16xf32>
    %185 = vector.shape_cast %184 : vector<16xf32> to vector<16x1xf32>
    %186 = vector.broadcast %185 : vector<16x1xf32> to vector<16x16xf32>
    %187 = arith.subf %183, %186 : vector<16x16xf32>
    %188 = math.exp %187 : vector<16x16xf32>
    %cst_64 = arith.constant dense<0.000000e+00> : vector<16xf32>
    %189 = vector.multi_reduction <add>, %188, %cst_64 [1] : vector<16x16xf32> to vector<16xf32>
    %190 = vector.shape_cast %189 : vector<16xf32> to vector<16x1xf32>
    %cst_65 = arith.constant 1.000000e-30 : f32
    %191 = vector.broadcast %cst_65 : f32 to vector<16x1xf32>
    %192 = arith.maximumf %190, %191 : vector<16x1xf32>
    %193 = tpu.reciprocal %192 {approx = true} : vector<16x1xf32> -> vector<16x1xf32>
    %194 = arith.mulf %193, %11 : vector<16x1xf32>
    %195 = vector.broadcast %194 : vector<16x1xf32> to vector<16x16xf32>
    %196 = arith.mulf %188, %195 : vector<16x16xf32>
    %197 = vector.extract_strided_slice %143 {offsets = [0, 32], sizes = [16, 32], strides = [1, 1]} : vector<16x64xf32> to vector<16x32xf32>
    %cst_66 = arith.constant dense<0.000000e+00> : vector<16x32xf32>
    %198 = tpu.matmul %196, %197, %cst_66 {dimension_numbers = #tpu.dot_dimension_numbers<[1], [0], [0], [1], [0, 0, 1, 1], [], []>} : vector<16x16xf32>, vector<16x32xf32>, vector<16x32xf32> -> vector<16x32xf32>
    %199 = tpu.concatenate %172, %198 in 1 : vector<16x32xf32>, vector<16x32xf32> -> vector<16x64xf32>
    %c0_67 = arith.constant 0 : index
    %c0_68 = arith.constant 0 : index
    %200 = vector.load %arg10[%c0_67, %c0_68] : memref<1x64xf32, #tpu.memory_space<vmem>>, vector<1x64xf32>
    %201 = vector.broadcast %200 : vector<1x64xf32> to vector<16x64xf32>
    %202 = arith.addf %199, %201 : vector<16x64xf32>
    %cst_69 = arith.constant 0.000000e+00 : f32
    %203 = vector.broadcast %cst_69 : f32 to vector<16x64xf32>
    %204 = arith.maximumf %202, %203 : vector<16x64xf32>
    %c0_70 = arith.constant 0 : index
    %c0_71 = arith.constant 0 : index
    %205 = vector.load %arg11[%c0_70, %c0_71] : memref<64x33xf32, #tpu.memory_space<vmem>>, vector<64x33xf32>
    %cst_72 = arith.constant dense<0.000000e+00> : vector<16x33xf32>
    %206 = tpu.matmul %204, %205, %cst_72 {dimension_numbers = #tpu.dot_dimension_numbers<[1], [0], [0], [1], [0, 0, 1, 1], [], []>} : vector<16x64xf32>, vector<64x33xf32>, vector<16x33xf32> -> vector<16x33xf32>
    %207 = vector.extract_strided_slice %206 {offsets = [0, 0], sizes = [16, 32], strides = [1, 1]} : vector<16x33xf32> to vector<16x32xf32>
    %208 = vector.extract_strided_slice %206 {offsets = [0, 32], sizes = [16, 1], strides = [1, 1]} : vector<16x33xf32> to vector<16x1xf32>
    %c0_73 = arith.constant 0 : index
    %c0_74 = arith.constant 0 : index
    %209 = vector.load %arg12[%c0_73, %c0_74] : memref<1x32xf32, #tpu.memory_space<vmem>>, vector<1x32xf32>
    %cst_75 = arith.constant dense<0.000000e+00> : vector<1x16xf32>
    %210 = tpu.matmul %209, %207, %cst_75 {dimension_numbers = #tpu.dot_dimension_numbers<[1], [1], [0], [0], [0, 0, 1, 0], [], []>} : vector<1x32xf32>, vector<16x32xf32>, vector<1x16xf32> -> vector<1x16xf32>
    %211 = vector.broadcast %208 : vector<16x1xf32> to vector<16x16xf32>
    %212 = vector.broadcast %210 : vector<1x16xf32> to vector<16x16xf32>
    %213 = arith.addf %211, %212 : vector<16x16xf32>
    %cst_76 = arith.constant 0.000000e+00 : f32
    %214 = vector.broadcast %cst_76 : f32 to vector<16x16xf32>
    %215 = arith.cmpf ogt, %213, %214 : vector<16x16xf32>
    %cst_77 = arith.constant 2.000000e-01 : f32
    %216 = vector.broadcast %cst_77 : f32 to vector<16x16xf32>
    %217 = arith.mulf %216, %213 : vector<16x16xf32>
    %218 = arith.select %215, %213, %217 : vector<16x16xi1>, vector<16x16xf32>
    %219 = arith.addf %218, %5 : vector<16x16xf32>
    %cst_78 = arith.constant dense<0xFF800000> : vector<16xf32>
    %220 = vector.multi_reduction <maximumf>, %219, %cst_78 [1] : vector<16x16xf32> to vector<16xf32>
    %221 = vector.shape_cast %220 : vector<16xf32> to vector<16x1xf32>
    %222 = vector.broadcast %221 : vector<16x1xf32> to vector<16x16xf32>
    %223 = arith.subf %219, %222 : vector<16x16xf32>
    %224 = math.exp %223 : vector<16x16xf32>
    %cst_79 = arith.constant dense<0.000000e+00> : vector<16xf32>
    %225 = vector.multi_reduction <add>, %224, %cst_79 [1] : vector<16x16xf32> to vector<16xf32>
    %226 = vector.shape_cast %225 : vector<16xf32> to vector<16x1xf32>
    %cst_80 = arith.constant 1.000000e-30 : f32
    %227 = vector.broadcast %cst_80 : f32 to vector<16x1xf32>
    %228 = arith.maximumf %226, %227 : vector<16x1xf32>
    %229 = tpu.reciprocal %228 {approx = true} : vector<16x1xf32> -> vector<16x1xf32>
    %230 = arith.mulf %229, %11 : vector<16x1xf32>
    %231 = vector.broadcast %230 : vector<16x1xf32> to vector<16x16xf32>
    %232 = arith.mulf %224, %231 : vector<16x16xf32>
    %cst_81 = arith.constant dense<0.000000e+00> : vector<16x32xf32>
    %233 = tpu.matmul %232, %207, %cst_81 {dimension_numbers = #tpu.dot_dimension_numbers<[1], [0], [0], [1], [0, 0, 1, 1], [], []>} : vector<16x16xf32>, vector<16x32xf32>, vector<16x32xf32> -> vector<16x32xf32>
    %c0_82 = arith.constant 0 : index
    %c0_83 = arith.constant 0 : index
    %234 = vector.load %arg13[%c0_82, %c0_83] : memref<1x32xf32, #tpu.memory_space<vmem>>, vector<1x32xf32>
    %235 = vector.broadcast %234 : vector<1x32xf32> to vector<16x32xf32>
    %236 = arith.addf %233, %235 : vector<16x32xf32>
    %c0_84 = arith.constant 0 : index
    %c0_85 = arith.constant 0 : index
    %237 = vector.load %arg14[%c0_84, %c0_85] : memref<16x32xf32, #tpu.memory_space<vmem>>, vector<16x32xf32>
    tpu.vector_store %arg14[%c0_84, %c0_85], %236 {strides = array<i32>} : memref<16x32xf32, #tpu.memory_space<vmem>>, vector<16x32xf32>,
    return
  }
}

</mosaic_0001>

<bundles_post_ra>
// kernel: tpu_custom_call.1
= control target key start
LH: loop header
LB: loop body
LE: loop exit
PB: predicated region body
PF: predicated region fallthrough
CT: control target
= control target key end

     0   :  { %19 = vsyncpa [#allocation3], 0  ;;  %s2583_s0 = inlined_call_operand.vmem [shape: f32[16,8], index: 0, kind: input, shape index: {}]   ;;  %s2584_s1 = inlined_call_operand.hbm [shape: f32[16,16], index: 1, kind: input, shape index: {}]   ;;  %s2585_s2 = inlined_call_operand.hbm [shape: f32[8,66], index: 2, kind: input, shape index: {}]   ;;  %s2586_s3 = inlined_call_operand.vmem [shape: f32[2,64], index: 3, kind: input, shape index: {}]   ;;  %s2587_s4 = inlined_call_operand.vmem [shape: f32[1,64], index: 4, kind: input, shape index: {}]   ;;  %s2588_s5 = inlined_call_operand.vmem [shape: f32[64,66], index: 5, kind: input, shape index: {}]   ;;  %s2589_s6 = inlined_call_operand.vmem [shape: f32[2,64], index: 6, kind: input, shape index: {}]   ;;  %s2590_s7 = inlined_call_operand.vmem [shape: f32[1,64], index: 7, kind: input, shape index: {}]   ;;  %s2591_s8 = inlined_call_operand.vmem [shape: f32[64,66], index: 8, kind: input, shape index: {}]   ;;  %s2592_s9 = inlined_call_operand.vmem [shape: f32[2,64], index: 9, kind: input, shape index: {}]   ;;  %s2593_s10 = inlined_call_operand.vmem [shape: f32[1,64], index: 10, kind: input, shape index: {}]   ;;  %s2594_s11 = inlined_call_operand.vmem [shape: f32[64,33], index: 11, kind: input, shape index: {}]   ;;  %s2595_s12 = inlined_call_operand.vmem [shape: f32[1,32], index: 12, kind: input, shape index: {}]   ;;  %s2596_s13 = inlined_call_operand.vmem [shape: f32[1,32], index: 13, kind: input, shape index: {}]   ;;  %s2597_s14 = inlined_call_operand.hbm [shape: f32[16,32], index: 14, kind: output, shape index: {}]  }
   0x1   :  { %20 = vsyncpa [#allocation6], 0 }
   0x2   :  { %21 = vsyncpa [#allocation4], 0  ;;  %s2175_s29 = smov [#allocation2]  }
   0x3   :  { %s29_s30 = sshll.u32 %s2175_s29, 4  ;;  %s30_s30 = int_to_ptr.vmem [resolvable:$true] %s29_s30 }
   0x4   :  { %s2117_s15 = scalar_lea.vmem %s30_s30, 256  ;;  %p2122_p1 = scmp.lt.s32.totalorder %s30_s30, %s30_s30 }
   0x5   :  { %p2118_p0 = scmp.ne.s32.totalorder %s30_s30, %s2117_s15  ;;  %p2123_p2 = scmp.lt.s32.totalorder %s2117_s15, %s2117_s15 }
   0x7   :  { %p2124_p3 = por %p2123_p2, %p2122_p1 }
   0x9   :  { %p2125_p4 = pnand %p2124_p3, %p2118_p0 }
   0xb   :  { %2128 = shalt.err (!%p2125_p4)
}
   0xc   :  { %s2176_s16 = smov 128   ;;  %s2177_s17 = smov 8  }
   0xd   :  { %35 = dma.hbm_to_vmem [thread:$0]  %s2584_s1, 256, %s30_s30, [#allocation3], %s2176_s16, %s2176_s16, %s2177_s17  }
   0xe   :  { %s2178_s20 = smov [#allocation5]  }
   0xf   :  { %s42_s21 = sshll.u32 %s2178_s20, 4  ;;  %s43_s21 = int_to_ptr.vmem [resolvable:$true] %s42_s21 }
  0x10   :  { %s2137_s22 = scalar_lea.vmem %s43_s21, 128  ;;  %p2142_p6 = scmp.lt.s32.totalorder %s43_s21, %s43_s21 }
  0x11   :  { %p2138_p5 = scmp.ne.s32.totalorder %s43_s21, %s2137_s22  ;;  %p2143_p7 = scmp.lt.s32.totalorder %s2137_s22, %s2137_s22 }
  0x13   :  { %p2144_p8 = por %p2143_p7, %p2142_p6 }
  0x15   :  { %p2145_p9 = pnand %p2144_p8, %p2138_p5 }
  0x17   :  { %2148 = shalt.err (!%p2145_p9)
}
  0x18   :  { %45 = dma.hbm_to_vmem [thread:$0]  %s2585_s2, 128, %s43_s21, [#allocation6]  }
  0x19   :  { %2169 = dma.done.wait [#allocation3], 256  }
  0x1a   :  { %2170 = vsyncadd [#allocation3], 4294967040 }
  0x1b   :  { %2171 = dma.done.wait [#allocation6], 128  }
  0x1c   :  { %2172 = vsyncadd [#allocation6], 4294967168  ;;  %vm96_vm0 = vcmask 64512   ;;  %v95_v0 = vld [vmem:[#allocation5] sm:$0xff]  ;;  %v93_v1 = vld [vmem:[%s2583_s0] sm:$0xff]  ;;  %v2179_v3 = vmov 0.0   ;;  %v267_v9 = vlaneseq }
  0x1d   :  { %v94_v2 = vld [vmem:[%s2583_s0 + $0x8] sm:$0xff]  ;;  %1891 = vmatprep.subr.mxu0 %v95_v0  ;;  %1893 = vmatprep.mubr.msk.f32.mxu0 %vm96_vm0, %v93_v1  ;;  %v2180_v4 = vmov 65   ;;  %v2181_v5 = vmov 64   ;;  %vm2182_vm1 = vmmov 0   ;;  %vm179_vm2 = vcmask 523264   ;;  %v74_v16 = vld [vmem:[#allocation2] sm:$0xff] }
  0x1e   :  { %1892 = vmatpush3.msra.mxu0 %v95_v0  ;;  %1896 = vmatprep.subr.mxu1 %v2179_v3  ;;  %v178_v8 = vld [vmem:[%s2586_s3] sm:$0x3]  ;;  %v268_v10 = vshrl.u32 %v267_v9, 7  ;;  %v75_v15 = vld [vmem:[#allocation2 + $0x8] sm:$0xff]  ;;  %vm76_vm4 = vcmp.gt.f32.partialorder %v74_v16, 0.0  ;;  %vm80_vm8 = vcmask 130048  }
  0x1f   :  { %1894 = vmatmul.mubr.msk.f32.vlgmr.msra.gmra.mxu0 %vm96_vm0, %v94_v2  ;;  %2044 = vset.pattern.permute.xlu1 %v2180_v4  ;;  %vm77_vm3 = vcmp.gt.f32.partialorder %v75_v15, 0.0  ;;  %v2183_v27 = vmov -1e+30   ;;  %v81_v46 = vsel %vm80_vm8, %v74_v16, 0.0  ;;  %v84_v47 = vsel %vm80_vm8, %v75_v15, 0.0  ;;  %s2184_s3 = smov 96  }
  0x20   :  { %2043 = vset.pattern.permute.xlu0 %v2181_v5  ;;  %1900 = vmatprep.mubr.msk.f32.mxu1 %vm2182_vm1, %v2179_v3  ;;  %v2305_v13 = vsub.s32 0, %v268_v10  ;;  %v2307_v14 = vsub.s32 1, %v268_v10  ;;  %v2311_v28 = vsel %vm77_vm3, 0.0, %v2183_v27  ;;  %v2313_v29 = vsel %vm76_vm4, 0.0, %v2183_v27  ;;  %s2185_s2 = smov 32   ;;  %s2187_s28 = smov [#allocation7]  }
  0x21   :  { %vm531_vm12 = vcmask 261120   ;;  %s1765_s29 = sshll.u32 %s2187_s28, 4  ;;  %s1766_s29 = int_to_ptr.vmem [resolvable:$true] %s1765_s29 }
  0x22   :  { %p2154_p11 = scmp.lt.s32.totalorder %s1766_s29, %s1766_s29 }
  0xdf   :  { %v2283_v6 = vpop.f32.mrf.mxu0 }
  0xe0   :  { %1897 = vmatpush3.xpose.msk.msra.mxu1 %vm179_vm2, %v2283_v6  ;;  %1903 = vmatprep.subr.mxu0 %v2283_v6 }
  0xe1   :  { %v2288_v7 = vpop.f32.mrf.mxu0  ;;  %1904 = vmatpush3.msra.mxu0 %v2283_v6  ;;  %1898 = vmatprep.subr.mxu1 %v2179_v3 }
  0xe2   :  { %389 = vperm.xlu1 %2044, %v2288_v7   ;;  %260 = vperm.xlu0 %2043, %v2288_v7  }
  0xe3   :  { %1905 = vmatprep.subr.mxu0 %v2288_v7 }
  0xe4   :  { %1906 = vmatpush3.msra.mxu0 %v2288_v7  ;;  %1899 = vmatpush3.xpose.msk.msra.mxu1 %vm179_vm2, %v2288_v7 }
  0xe6   :  { %393 = vperm.xlu1 %2044, %v2283_v6   ;;  %264 = vperm.xlu0 %2043, %v2283_v6  }
  0xe7   :  { %1901 = vmatmul.mubr.msk.f32.vlgmr.msra.gmra.mxu1 %vm179_vm2, %v178_v8 }
  0xea   :  { %2045 = vset.pattern.permute.xlu1 %v2181_v5 }
 0x15d   :  { %v390_v11 = vpop.permute.xlu1 %389  ;;  %v261_v12 = vpop.permute.xlu0 %260 }
 0x161   :  { %v394_v18 = vpop.permute.xlu1 %393  ;;  %v265_v21 = vpop.permute.xlu0 %264 }
 0x1a7   :  { %v255_v17 = vpop.f32.mrf.mxu1 }
 0x1a8   :  { %v270_v19 = vrot.slane %v255_v17, %v2305_v13  ;;  %v399_v20 = vrot.slane %v255_v17, %v2307_v14 }
 0x1a9   :  { %v1902_v22 = vpop.f32.mrf.mxu1 }
 0x1aa   :  { %v271_v23 = vadd.f32 %v270_v19, %v261_v12  ;;  %v272_v24 = vadd.f32 %v270_v19, %v265_v21  ;;  %v400_v25 = vadd.f32 %v399_v20, %v390_v11  ;;  %v401_v26 = vadd.f32 %v399_v20, %v394_v18 }
 0x1ac   :  { %vm274_vm5 = vcmp.gt.f32.partialorder %v272_v24, 0.0  ;;  %v276_v30 = vmul.f32 0.2, %v272_v24  ;;  %vm273_vm6 = vcmp.gt.f32.partialorder %v271_v23, 0.0  ;;  %v275_v31 = vmul.f32 0.2, %v271_v23 }
 0x1ad   :  { %vm402_vm7 = vcmp.gt.f32.partialorder %v400_v25, 0.0  ;;  %v404_v32 = vmul.f32 0.2, %v400_v25  ;;  %v405_v35 = vmul.f32 0.2, %v401_v26  ;;  %vm403_vm9 = vcmp.gt.f32.partialorder %v401_v26, 0.0 }
 0x1ae   :  { %v278_v33 = vsel %vm274_vm5, %v272_v24, %v276_v30  ;;  %v277_v34 = vsel %vm273_vm6, %v271_v23, %v275_v31 }
 0x1af   :  { %v280_v36 = vadd.f32 %v278_v33, %v2311_v28  ;;  %v279_v37 = vadd.f32 %v277_v34, %v2313_v29  ;;  %v406_v38 = vsel %vm402_vm7, %v400_v25, %v404_v32  ;;  %v407_v42 = vsel %vm403_vm9, %v401_v26, %v405_v35 }
 0x1b0   :  { %v408_v41 = vadd.f32 %v406_v38, %v2313_v29  ;;  %v409_v44 = vadd.f32 %v407_v42, %v2311_v28  ;;  %v551_v38 = vld [vmem:[%s2588_s5 + $0x30] sm:$0xff] }
 0x1b1   :  { %v284_v39 = vsel %vm80_vm8, %v280_v36, -inf  ;;  %v281_v40 = vsel %vm80_vm8, %v279_v37, -inf  ;;  %v547_v42 = vld [vmem:[%s2588_s5 + $0x10] sm:$0xff] }
 0x1b2   :  { %285 = vmax.xlane.f32.xlu1 %v284_v39  ;;  %282 = vmax.xlane.f32.xlu0 %v281_v40  ;;  %v410_v43 = vsel %vm80_vm8, %v408_v41, -inf  ;;  %v413_v45 = vsel %vm80_vm8, %v409_v44, -inf  ;;  %v550_v39 = vld [vmem:[%s2588_s5 + $0x28] sm:$0xff]  ;;  %v549_v40 = vld [vmem:[%s2588_s5 + $0x20] sm:$0xff] }
 0x1b6   :  { %411 = vmax.xlane.f32.xlu0 %v410_v43  ;;  %82 = vadd.xlane.f32.xlu1 %v81_v46 }
 0x1ba   :  { %414 = vmax.xlane.f32.xlu0 %v413_v45  ;;  %v545_v45 = vld [vmem:[%s2588_s5] sm:$0xff] }
 0x1be   :  { %85 = vadd.xlane.f32.xlu0 %v84_v47 }
 0x23b   :  { %v286_v48 = vpop.xlane.xlu1 %285  ;;  %v283_v49 = vpop.xlane.xlu0 %282 }
 0x23c   :  { %v288_v50 = vsub.f32 %v280_v36, %v286_v48  ;;  %v287_v51 = vsub.f32 %v279_v37, %v283_v49  ;;  %v552_v37 = vld [vmem:[%s2588_s5 + $0x38] sm:$0xff]  ;;  %v1789_v49 = vld [vmem:[%s2587_s4] ss:$0 sm:$0xff]  ;;  %s2149_s4 = scalar_lea.vmem %s1766_s29, 256 }
 0x23d   :  { %1917 = vmatprep.subr.mxu1 %v552_v37  ;;  %p2150_p10 = scmp.ne.s32.totalorder %s1766_s29, %s2149_s4  ;;  %p2155_p12 = scmp.lt.s32.totalorder %s2149_s4, %s2149_s4 }
 0x23e   :  { %v291_v52 = vmul.f32 1.442695, %v288_v50  ;;  %v289_v53 = vmul.f32 1.442695, %v287_v51  ;;  %1918 = vmatpush3.msra.mxu1 %v552_v37 }
 0x23f   :  { %v412_v54 = vpop.xlane.xlu0 %411  ;;  %v83_v10 = vpop.xlane.xlu1 %82  ;;  %1919 = vmatprep.subr.mxu1 %v551_v38  ;;  %p2156_p13 = por %p2155_p12, %p2154_p11 }
 0x240   :  { %2053 = vpow2.f32 %v291_v52  ;;  %v416_v55 = vsub.f32 %v408_v41, %v412_v54  ;;  %vm87_vm11 = vcmp.gt.f32.partialorder %v83_v10, 0.0  ;;  %1920 = vmatpush3.msra.mxu1 %v551_v38  ;;  %v548_v41 = vld [vmem:[%s2588_s5 + $0x18] sm:$0xff] }
 0x241   :  { %2055 = vpow2.f32 %v289_v53  ;;  %v2337_v23 = vsel %vm87_vm11, 1.0, %v2179_v3  ;;  %1921 = vmatprep.subr.mxu1 %v550_v39  ;;  %p2157_p0 = pnand %p2156_p13, %p2150_p10 }
 0x242   :  { %v418_v56 = vmul.f32 1.442695, %v416_v55  ;;  %1922 = vmatpush3.msra.mxu1 %v550_v39 }
 0x243   :  { %v415_v57 = vpop.xlane.xlu0 %414  ;;  %1923 = vmatprep.subr.mxu1 %v549_v40 }
 0x244   :  { %2057 = vpow2.f32 %v418_v56  ;;  %v417_v58 = vsub.f32 %v409_v44, %v415_v57  ;;  %1924 = vmatpush3.msra.mxu1 %v549_v40  ;;  %v546_v44 = vld [vmem:[%s2588_s5 + $0x8] sm:$0xff] }
 0x245   :  { %1925 = vmatprep.subr.mxu1 %v548_v41 }
 0x246   :  { %v420_v59 = vmul.f32 1.442695, %v417_v58  ;;  %1926 = vmatpush3.msra.mxu1 %v548_v41 }
 0x247   :  { %v86_v9 = vpop.xlane.xlu0 %85  ;;  %1927 = vmatprep.subr.mxu1 %v547_v42 }
 0x248   :  { %2059 = vpow2.f32 %v420_v59  ;;  %vm88_vm10 = vcmp.gt.f32.partialorder %v86_v9, 0.0  ;;  %1928 = vmatpush3.msra.mxu1 %v547_v42 }
 0x249   :  { %1929 = vmatprep.subr.mxu1 %v546_v44 }
 0x24a   :  { %1930 = vmatpush3.msra.mxu1 %v546_v44 }
 0x24b   :  { %1931 = vmatprep.subr.mxu1 %v545_v45 }
 0x24c   :  { %1932 = vmatpush3.msra.mxu1 %v545_v45 }
 0x24d   :  { %v2054_v60 = vpop.eup %2053 }
 0x24e   :  { %v2056_v61 = vpop.eup %2055  ;;  %v296_v62 = vsel %vm80_vm8, %v2054_v60, 0.0 }
 0x24f   :  { %297 = vadd.xlane.f32.xlu0 %v296_v62  ;;  %v293_v63 = vsel %vm80_vm8, %v2056_v61, 0.0 }
 0x250   :  { %294 = vadd.xlane.f32.xlu1 %v293_v63 }
 0x251   :  { %v2058_v0 = vpop.eup %2057 }
 0x252   :  { %v422_v1 = vsel %vm80_vm8, %v2058_v0, 0.0 }
 0x254   :  { %423 = vadd.xlane.f32.xlu1 %v422_v1 }
 0x255   :  { %v2060_v2 = vpop.eup %2059 }
 0x256   :  { %v425_v8 = vsel %vm80_vm8, %v2060_v2, 0.0 }
 0x257   :  { %426 = vadd.xlane.f32.xlu0 %v425_v8 }
 0x265   :  { %438 = vrot.lane.b32.xlu1 %v2283_v6, %s2184_s3 }
 0x26d   :  { %436 = vrot.lane.b32.xlu0 %v2288_v7, %s2184_s3  ;;  %v2334_v7 = vsel %vm88_vm10, 1.0, %v2179_v3 }
 0x2d8   :  { %v298_v11 = vpop.xlane.xlu0 %297 }
 0x2d9   :  { %v295_v12 = vpop.xlane.xlu1 %294  ;;  %v300_v15 = vmax.f32 %v298_v11, 1e-30 }
 0x2da   :  { %v299_v16 = vmax.f32 %v295_v12, 1e-30 }
 0x2db   :  { %2061 = vrcp.f32 %v300_v15 }
 0x2dc   :  { %2063 = vrcp.f32 %v299_v16 }
 0x2dd   :  { %v424_v17 = vpop.xlane.xlu1 %423 }
 0x2de   :  { %v428_v18 = vmax.f32 %v424_v17, 1e-30 }
 0x2e0   :  { %2065 = vrcp.f32 %v428_v18  ;;  %v427_v19 = vpop.xlane.xlu0 %426 }
 0x2e1   :  { %v439_v20 = vpop.permute.xlu1 %438  ;;  %v429_v21 = vmax.f32 %v427_v19, 1e-30 }
 0x2e2   :  { %1910 = vmatprep.subr.mxu0 %v439_v20 }
 0x2e3   :  { %2067 = vrcp.f32 %v429_v21 }
 0x2e4   :  { %v437_v33 = vpop.permute.xlu0 %436 }
 0x2e8   :  { %v2062_v6 = vpop.eup %2061 }
 0x2e9   :  { %v2064_v22 = vpop.eup %2063  ;;  %v304_v24 = vmul.f32 %v2062_v6, %v2334_v7 }
 0x2ea   :  { %v303_v25 = vmul.f32 %v2064_v22, %v2337_v23 }
 0x2eb   :  { %v306_v26 = vmul.f32 %v2054_v60, %v304_v24  ;;  %v634_v60 = vld [vmem:[%s2589_s6] sm:$0x3] }
 0x2ec   :  { %v305_v27 = vmul.f32 %v2056_v61, %v303_v25 }
 0x2ed   :  { %v2066_v30 = vpop.eup %2065 }
 0x2ee   :  { %1907 = vmatprep.mubr.msk.f32.mxu0 %vm80_vm8, %v305_v27  ;;  %v432_v31 = vmul.f32 %v2066_v30, %v2337_v23 }
 0x2ef   :  { %1908 = vmatmul.mubr.msk.f32.vlgmr.msra.gmra.mxu0 %vm80_vm8, %v306_v26 }
 0x2f0   :  { %v2068_v32 = vpop.eup %2067  ;;  %1911 = vmatpush3.msra.mxu0 %v439_v20  ;;  %v434_v34 = vmul.f32 %v2058_v0, %v432_v31 }
 0x2f1   :  { %1912 = vmatprep.subr.mxu0 %v437_v33  ;;  %v433_v35 = vmul.f32 %v2068_v32, %v2334_v7 }
 0x2f2   :  { %1913 = vmatpush3.msra.mxu0 %v437_v33  ;;  %1914 = vmatprep.mubr.msk.f32.mxu0 %vm80_vm8, %v434_v34 }
 0x2f3   :  { %v435_v36 = vmul.f32 %v2060_v2, %v433_v35  ;;  %1936 = vmatprep.subr.mxu0 %v2179_v3 }
 0x2f5   :  { %1915 = vmatmul.mubr.msk.f32.vlgmr.msra.gmra.mxu0 %vm80_vm8, %v435_v36 }
 0x2f6   :  { %1940 = vmatprep.mubr.msk.f32.mxu0 %vm2182_vm1, %v2179_v3 }
 0x3af   :  { %v1909_v43 = vpop.f32.mrf.mxu0 }
 0x3b1   :  { %v379_v46 = vpop.f32.mrf.mxu0 }
 0x3b5   :  { %v1916_v47 = vpop.f32.mrf.mxu0 }
 0x3b7   :  { %v514_v48 = vpop.f32.mrf.mxu0 }
 0x3b8   :  { %525 = vrot.lane.b32.xlu1 %v514_v48, %s2185_s2 }
 0x3bc   :  { %527 = vrot.lane.b32.xlu1 %v1916_v47, %s2185_s2 }
 0x42a   :  { %v526_v50 = vpop.permute.xlu1 %525 }
 0x42b   :  { %v532_v51 = vsel %vm531_vm12, %v379_v46, %v526_v50 }
 0x42c   :  { %v541_v52 = vadd.f32 %v1789_v49, %v532_v51 }
 0x42e   :  { %v543_v53 = vmax.f32 %v541_v52, 0.0  ;;  %v528_v54 = vpop.permute.xlu1 %527 }
 0x42f   :  { %v533_v55 = vsel %vm531_vm12, %v1909_v43, %v528_v54 }
 0x430   :  { %v542_v56 = vadd.f32 %v1789_v49, %v533_v55  ;;  %1933 = vmatprep.mubr.msk.f32.mxu1 %vm179_vm2, %v543_v53 }
 0x432   :  { %v544_v57 = vmax.f32 %v542_v56, 0.0 }
 0x434   :  { %1934 = vmatmul.mubr.msk.f32.vlgmr.msra.gmra.mxu1 %vm179_vm2, %v544_v57 }
 0x4f4   :  { %v2383_v58 = vpop.f32.mrf.mxu1 }
 0x4f5   :  { %719 = vperm.xlu1 %2045, %v2383_v58   ;;  %1937 = vmatpush3.xpose.msk.msra.mxu0 %vm179_vm2, %v2383_v58 }
 0x4f6   :  { %v2388_v59 = vpop.f32.mrf.mxu1  ;;  %1938 = vmatprep.subr.mxu0 %v2179_v3 }
 0x4f7   :  { %715 = vperm.xlu0 %2043, %v2388_v59  }
 0x4f9   :  { %2047 = vset.pattern.permute.xlu1 %v2180_v4  ;;  %1939 = vmatpush3.xpose.msk.msra.mxu0 %vm179_vm2, %v2388_v59 }
 0x4fa   :  { %848 = vperm.xlu1 %2047, %v2383_v58   ;;  %1943 = vmatprep.subr.mxu0 %v2383_v58 }
 0x4fb   :  { %2046 = vset.pattern.permute.xlu0 %v2180_v4 }
 0x4fc   :  { %844 = vperm.xlu0 %2046, %v2388_v59   ;;  %1941 = vmatmul.mubr.msk.f32.vlgmr.msra.gmra.mxu0 %vm179_vm2, %v634_v60 }
 0x4fd   :  { %1944 = vmatpush3.msra.mxu0 %v2383_v58 }
 0x4fe   :  { %1945 = vmatprep.subr.mxu0 %v2388_v59  ;;  %2049 = vset.pattern.permute.xlu1 %v2181_v5 }
 0x4ff   :  { %1946 = vmatpush3.msra.mxu0 %v2388_v59 }
 0x500   :  { %2048 = vset.pattern.permute.xlu0 %v2181_v5 }
 0x570   :  { %v720_v61 = vpop.permute.xlu1 %719 }
 0x572   :  { %v716_v62 = vpop.permute.xlu0 %715 }
 0x575   :  { %v849_v0 = vpop.permute.xlu1 %848 }
 0x577   :  { %v845_v8 = vpop.permute.xlu0 %844 }
 0x5bc   :  { %v710_v63 = vpop.f32.mrf.mxu0 }
 0x5bd   :  { %v725_v1 = vrot.slane %v710_v63, %v2305_v13  ;;  %v854_v2 = vrot.slane %v710_v63, %v2307_v14 }
 0x5be   :  { %v1942_v9 = vpop.f32.mrf.mxu0 }
 0x5bf   :  { %v726_v10 = vadd.f32 %v725_v1, %v716_v62  ;;  %v727_v11 = vadd.f32 %v725_v1, %v720_v61  ;;  %v855_v12 = vadd.f32 %v854_v2, %v845_v8  ;;  %v856_v15 = vadd.f32 %v854_v2, %v849_v0 }
 0x5c1   :  { %vm729_vm13 = vcmp.gt.f32.partialorder %v727_v11, 0.0  ;;  %v731_v16 = vmul.f32 0.2, %v727_v11  ;;  %vm728_vm14 = vcmp.gt.f32.partialorder %v726_v10, 0.0  ;;  %v730_v17 = vmul.f32 0.2, %v726_v10 }
 0x5c2   :  { %vm857_vm15 = vcmp.gt.f32.partialorder %v855_v12, 0.0  ;;  %v859_v5 = vmul.f32 0.2, %v855_v12  ;;  %vm858_vm0 = vcmp.gt.f32.partialorder %v856_v15, 0.0  ;;  %v860_v18 = vmul.f32 0.2, %v856_v15 }
 0x5c3   :  { %v733_v19 = vsel %vm729_vm13, %v727_v11, %v731_v16  ;;  %v732_v20 = vsel %vm728_vm14, %v726_v10, %v730_v17 }
 0x5c4   :  { %v735_v21 = vadd.f32 %v733_v19, %v2311_v28  ;;  %v734_v6 = vadd.f32 %v732_v20, %v2313_v29  ;;  %v861_v22 = vsel %vm857_vm15, %v855_v12, %v859_v5  ;;  %v862_v24 = vsel %vm858_vm0, %v856_v15, %v860_v18  ;;  %v1006_v5 = vld [vmem:[%s2591_s8 + $0x38] sm:$0xff]  ;;  %v1005_v18 = vld [vmem:[%s2591_s8 + $0x30] sm:$0xff]  ;;  %v1004_v19 = vld [vmem:[%s2591_s8 + $0x28] sm:$0xff] }
 0x5c5   :  { %v863_v27 = vadd.f32 %v861_v22, %v2313_v29  ;;  %v864_v30 = vadd.f32 %v862_v24, %v2311_v28  ;;  %1957 = vmatprep.subr.mxu1 %v1006_v5  ;;  %v1003_v20 = vld [vmem:[%s2591_s8 + $0x20] sm:$0xff]  ;;  %v1000_v22 = vld [vmem:[%s2591_s8 + $0x8] sm:$0xff] }
 0x5c6   :  { %v739_v25 = vsel %vm80_vm8, %v735_v21, -inf  ;;  %v736_v26 = vsel %vm80_vm8, %v734_v6, -inf  ;;  %1958 = vmatpush3.msra.mxu1 %v1006_v5  ;;  %v999_v24 = vld [vmem:[%s2591_s8] sm:$0xff] }
 0x5c7   :  { %740 = vmax.xlane.f32.xlu0 %v739_v25  ;;  %737 = vmax.xlane.f32.xlu1 %v736_v26  ;;  %v865_v31 = vsel %vm80_vm8, %v863_v27, -inf  ;;  %v868_v32 = vsel %vm80_vm8, %v864_v30, -inf }
 0x5c8   :  { %1959 = vmatprep.subr.mxu1 %v1005_v18 }
 0x5c9   :  { %1960 = vmatpush3.msra.mxu1 %v1005_v18 }
 0x5ca   :  { %1961 = vmatprep.subr.mxu1 %v1004_v19 }
 0x5cb   :  { %866 = vmax.xlane.f32.xlu0 %v865_v31  ;;  %869 = vmax.xlane.f32.xlu1 %v868_v32  ;;  %v1799_v31 = vld [vmem:[%s2590_s7] ss:$0 sm:$0xff] }
 0x5cc   :  { %1962 = vmatpush3.msra.mxu1 %v1004_v19 }
 0x5cd   :  { %1963 = vmatprep.subr.mxu1 %v1003_v20 }
 0x5ce   :  { %1964 = vmatpush3.msra.mxu1 %v1003_v20 }
 0x650   :  { %v741_v33 = vpop.xlane.xlu0 %740  ;;  %v738_v34 = vpop.xlane.xlu1 %737 }
 0x651   :  { %v743_v35 = vsub.f32 %v735_v21, %v741_v33  ;;  %v742_v36 = vsub.f32 %v734_v6, %v738_v34  ;;  %v1002_v21 = vld [vmem:[%s2591_s8 + $0x18] sm:$0xff]  ;;  %v1001_v6 = vld [vmem:[%s2591_s8 + $0x10] sm:$0xff] }
 0x652   :  { %1965 = vmatprep.subr.mxu1 %v1002_v21 }
 0x653   :  { %v746_v37 = vmul.f32 1.442695, %v743_v35  ;;  %v744_v38 = vmul.f32 1.442695, %v742_v36  ;;  %1966 = vmatpush3.msra.mxu1 %v1002_v21 }
 0x654   :  { %v867_v39 = vpop.xlane.xlu0 %866  ;;  %v870_v40 = vpop.xlane.xlu1 %869  ;;  %1967 = vmatprep.subr.mxu1 %v1001_v6 }
 0x655   :  { %2069 = vpow2.f32 %v746_v37  ;;  %v871_v41 = vsub.f32 %v863_v27, %v867_v39  ;;  %v872_v42 = vsub.f32 %v864_v30, %v870_v40  ;;  %1968 = vmatpush3.msra.mxu1 %v1001_v6 }
 0x656   :  { %2071 = vpow2.f32 %v744_v38  ;;  %1969 = vmatprep.subr.mxu1 %v1000_v22 }
 0x657   :  { %v873_v43 = vmul.f32 1.442695, %v871_v41  ;;  %v875_v44 = vmul.f32 1.442695, %v872_v42  ;;  %1970 = vmatpush3.msra.mxu1 %v1000_v22  ;;  %v1088_v42 = vld [vmem:[%s2592_s9] sm:$0x3] }
 0x658   :  { %1971 = vmatprep.subr.mxu1 %v999_v24 }
 0x659   :  { %2073 = vpow2.f32 %v873_v43  ;;  %1972 = vmatpush3.msra.mxu1 %v999_v24 }
 0x65a   :  { %2075 = vpow2.f32 %v875_v44 }
 0x662   :  { %v2070_v45 = vpop.eup %2069 }
 0x663   :  { %v2072_v46 = vpop.eup %2071  ;;  %v751_v47 = vsel %vm80_vm8, %v2070_v45, 0.0 }
 0x664   :  { %752 = vadd.xlane.f32.xlu1 %v751_v47  ;;  %v748_v48 = vsel %vm80_vm8, %v2072_v46, 0.0 }
 0x665   :  { %749 = vadd.xlane.f32.xlu0 %v748_v48 }
 0x666   :  { %v2074_v49 = vpop.eup %2073 }
 0x667   :  { %v2076_v50 = vpop.eup %2075  ;;  %v877_v51 = vsel %vm80_vm8, %v2074_v49, 0.0 }
 0x668   :  { %v880_v52 = vsel %vm80_vm8, %v2076_v50, 0.0 }
 0x669   :  { %878 = vadd.xlane.f32.xlu0 %v877_v51  ;;  %881 = vadd.xlane.f32.xlu1 %v880_v52 }
 0x67a   :  { %891 = vrot.lane.b32.xlu1 %v2388_v59, %s2184_s3 }
 0x67f   :  { %893 = vrot.lane.b32.xlu0 %v2383_v58, %s2184_s3 }
 0x6ed   :  { %v753_v53 = vpop.xlane.xlu1 %752 }
 0x6ee   :  { %v750_v54 = vpop.xlane.xlu0 %749  ;;  %v755_v55 = vmax.f32 %v753_v53, 1e-30 }
 0x6ef   :  { %v754_v56 = vmax.f32 %v750_v54, 1e-30 }
 0x6f0   :  { %2077 = vrcp.f32 %v755_v55 }
 0x6f1   :  { %2079 = vrcp.f32 %v754_v56 }
 0x6f2   :  { %v879_v57 = vpop.xlane.xlu0 %878  ;;  %v882_v60 = vpop.xlane.xlu1 %881 }
 0x6f3   :  { %v883_v61 = vmax.f32 %v879_v57, 1e-30  ;;  %v884_v62 = vmax.f32 %v882_v60, 1e-30 }
 0x6f5   :  { %2081 = vrcp.f32 %v883_v61 }
 0x6f6   :  { %2083 = vrcp.f32 %v884_v62  ;;  %v894_v63 = vpop.permute.xlu0 %893  ;;  %v892_v15 = vpop.permute.xlu1 %891 }
 0x6f7   :  { %1950 = vmatprep.subr.mxu0 %v894_v63 }
 0x6fd   :  { %v2078_v0 = vpop.eup %2077 }
 0x6fe   :  { %v2080_v1 = vpop.eup %2079  ;;  %v759_v59 = vmul.f32 %v2078_v0, %v2334_v7 }
 0x6ff   :  { %v758_v58 = vmul.f32 %v2080_v1, %v2337_v23 }
 0x700   :  { %v761_v2 = vmul.f32 %v2070_v45, %v759_v59 }
 0x701   :  { %v760_v8 = vmul.f32 %v2072_v46, %v758_v58 }
 0x702   :  { %v2082_v9 = vpop.eup %2081 }
 0x703   :  { %v2084_v10 = vpop.eup %2083  ;;  %1947 = vmatprep.mubr.msk.f32.mxu0 %vm80_vm8, %v760_v8  ;;  %v887_v11 = vmul.f32 %v2082_v9, %v2337_v23 }
 0x704   :  { %1948 = vmatmul.mubr.msk.f32.vlgmr.msra.gmra.mxu0 %vm80_vm8, %v761_v2  ;;  %v888_v12 = vmul.f32 %v2084_v10, %v2334_v7 }
 0x705   :  { %1951 = vmatpush3.msra.mxu0 %v894_v63  ;;  %v889_v16 = vmul.f32 %v2074_v49, %v887_v11 }
 0x706   :  { %1952 = vmatprep.subr.mxu0 %v892_v15  ;;  %v890_v17 = vmul.f32 %v2076_v50, %v888_v12 }
 0x707   :  { %1953 = vmatpush3.msra.mxu0 %v892_v15  ;;  %1954 = vmatprep.mubr.msk.f32.mxu0 %vm80_vm8, %v889_v16 }
 0x708   :  { %1955 = vmatmul.mubr.msk.f32.vlgmr.msra.gmra.mxu0 %vm80_vm8, %v890_v17  ;;  %1976 = vmatprep.subr.mxu0 %v2179_v3 }
 0x709   :  { %1980 = vmatprep.mubr.msk.f32.mxu0 %vm2182_vm1, %v2179_v3 }
 0x7c4   :  { %v1949_v25 = vpop.f32.mrf.mxu0 }
 0x7c6   :  { %v834_v26 = vpop.f32.mrf.mxu0 }
 0x7c8   :  { %v1956_v27 = vpop.f32.mrf.mxu0 }
 0x7c9   :  { %982 = vrot.lane.b32.xlu0 %v1956_v27, %s2185_s2 }
 0x7ca   :  { %v969_v30 = vpop.f32.mrf.mxu0 }
 0x7cb   :  { %980 = vrot.lane.b32.xlu1 %v969_v30, %s2185_s2 }
 0x83b   :  { %v983_v32 = vpop.permute.xlu0 %982 }
 0x83c   :  { %v987_v33 = vsel %vm531_vm12, %v1949_v25, %v983_v32 }
 0x83d   :  { %v981_v34 = vpop.permute.xlu1 %980  ;;  %v996_v35 = vadd.f32 %v1799_v31, %v987_v33 }
 0x83e   :  { %v986_v36 = vsel %vm531_vm12, %v834_v26, %v981_v34 }
 0x83f   :  { %v995_v37 = vadd.f32 %v1799_v31, %v986_v36  ;;  %v998_v39 = vmax.f32 %v996_v35, 0.0 }
 0x841   :  { %v997_v38 = vmax.f32 %v995_v37, 0.0 }
 0x843   :  { %1973 = vmatprep.mubr.msk.f32.mxu1 %vm179_vm2, %v997_v38 }
 0x844   :  { %1974 = vmatmul.mubr.msk.f32.vlgmr.msra.gmra.mxu1 %vm179_vm2, %v998_v39 }
 0x904   :  { %v2470_v40 = vpop.f32.mrf.mxu1 }
 0x905   :  { %1173 = vperm.xlu0 %2048, %v2470_v40   ;;  %1977 = vmatpush3.xpose.msk.msra.mxu0 %vm179_vm2, %v2470_v40 }
 0x906   :  { %v2475_v41 = vpop.f32.mrf.mxu1  ;;  %1978 = vmatprep.subr.mxu0 %v2179_v3 }
 0x907   :  { %1169 = vperm.xlu1 %2049, %v2475_v41  }
 0x909   :  { %1979 = vmatpush3.xpose.msk.msra.mxu0 %vm179_vm2, %v2475_v41 }
 0x90a   :  { %1983 = vmatprep.subr.mxu0 %v2470_v40 }
 0x90b   :  { %2050 = vset.pattern.permute.xlu1 %v2180_v4 }
 0x90c   :  { %1298 = vperm.xlu1 %2050, %v2475_v41   ;;  %1981 = vmatmul.mubr.msk.f32.vlgmr.msra.gmra.mxu0 %vm179_vm2, %v1088_v42 }
 0x90d   :  { %1984 = vmatpush3.msra.mxu0 %v2470_v40 }
 0x90e   :  { %1985 = vmatprep.subr.mxu0 %v2475_v41 }
 0x90f   :  { %1986 = vmatpush3.msra.mxu0 %v2475_v41 }
 0x910   :  { %1302 = vperm.xlu1 %2050, %v2470_v40  }
 0x980   :  { %v1174_v46 = vpop.permute.xlu0 %1173 }
 0x982   :  { %v1170_v43 = vpop.permute.xlu1 %1169 }
 0x987   :  { %v1299_v44 = vpop.permute.xlu1 %1298 }
 0x98b   :  { %v1303_v48 = vpop.permute.xlu1 %1302 }
 0x9cc   :  { %v1164_v45 = vpop.f32.mrf.mxu0 }
 0x9cd   :  { %v1179_v47 = vrot.slane %v1164_v45, %v2305_v13  ;;  %v1308_v4 = vrot.slane %v1164_v45, %v2307_v14 }
 0x9ce   :  { %v1982_v49 = vpop.f32.mrf.mxu0 }
 0x9cf   :  { %v1180_v50 = vadd.f32 %v1179_v47, %v1170_v43  ;;  %v1181_v51 = vadd.f32 %v1179_v47, %v1174_v46  ;;  %v1309_v52 = vadd.f32 %v1308_v4, %v1299_v44  ;;  %v1310_v53 = vadd.f32 %v1308_v4, %v1303_v48 }
 0x9d1   :  { %vm1183_vm3 = vcmp.gt.f32.partialorder %v1181_v51, 0.0  ;;  %v1185_v54 = vmul.f32 0.2, %v1181_v51  ;;  %vm1182_vm4 = vcmp.gt.f32.partialorder %v1180_v50, 0.0  ;;  %v1184_v55 = vmul.f32 0.2, %v1180_v50 }
 0x9d2   :  { %vm1311_vm5 = vcmp.gt.f32.partialorder %v1309_v52, 0.0  ;;  %v1313_v56 = vmul.f32 0.2, %v1309_v52  ;;  %v1314_v61 = vmul.f32 0.2, %v1310_v53  ;;  %vm1312_vm6 = vcmp.gt.f32.partialorder %v1310_v53, 0.0 }
 0x9d3   :  { %v1187_v57 = vsel %vm1183_vm3, %v1181_v51, %v1185_v54  ;;  %v1186_v60 = vsel %vm1182_vm4, %v1180_v50, %v1184_v55  ;;  %v1460_v54 = vld [vmem:[%s2594_s11 + $0x38] sm:$0xff]  ;;  %v1459_v55 = vld [vmem:[%s2594_s11 + $0x30] sm:$0xff] }
 0x9d4   :  { %v1189_v62 = vadd.f32 %v1187_v57, %v2311_v28  ;;  %v1188_v63 = vadd.f32 %v1186_v60, %v2313_v29  ;;  %v1315_v14 = vsel %vm1311_vm5, %v1309_v52, %v1313_v56  ;;  %v1316_v58 = vsel %vm1312_vm6, %v1310_v53, %v1314_v61  ;;  %1997 = vmatprep.subr.mxu1 %v1460_v54  ;;  %v1458_v56 = vld [vmem:[%s2594_s11 + $0x28] sm:$0xff]  ;;  %v1457_v57 = vld [vmem:[%s2594_s11 + $0x20] sm:$0xff]  ;;  %v1456_v60 = vld [vmem:[%s2594_s11 + $0x18] sm:$0xff] }
 0x9d5   :  { %v1317_v59 = vadd.f32 %v1315_v14, %v2313_v29  ;;  %v1318_v8 = vadd.f32 %v1316_v58, %v2311_v28  ;;  %1998 = vmatpush3.msra.mxu1 %v1460_v54  ;;  %v1455_v61 = vld [vmem:[%s2594_s11 + $0x10] sm:$0xff]  ;;  %v1453_v14 = vld [vmem:[%s2594_s11] sm:$0xff] }
 0x9d6   :  { %v1193_v0 = vsel %vm80_vm8, %v1189_v62, -inf  ;;  %v1190_v1 = vsel %vm80_vm8, %v1188_v63, -inf  ;;  %1999 = vmatprep.subr.mxu1 %v1459_v55 }
 0x9d7   :  { %1194 = vmax.xlane.f32.xlu1 %v1193_v0  ;;  %1191 = vmax.xlane.f32.xlu0 %v1190_v1  ;;  %v1319_v2 = vsel %vm80_vm8, %v1317_v59, -inf  ;;  %v1322_v9 = vsel %vm80_vm8, %v1318_v8, -inf }
 0x9d8   :  { %2000 = vmatpush3.msra.mxu1 %v1459_v55 }
 0x9d9   :  { %2001 = vmatprep.subr.mxu1 %v1458_v56 }
 0x9da   :  { %2002 = vmatpush3.msra.mxu1 %v1458_v56 }
 0x9db   :  { %1320 = vmax.xlane.f32.xlu0 %v1319_v2  ;;  %2003 = vmatprep.subr.mxu1 %v1457_v57  ;;  %v1809_v2 = vld [vmem:[%s2593_s10] ss:$0 sm:$0xff] }
 0x9dc   :  { %2004 = vmatpush3.msra.mxu1 %v1457_v57 }
 0x9dd   :  { %2005 = vmatprep.subr.mxu1 %v1456_v60 }
 0x9de   :  { %2006 = vmatpush3.msra.mxu1 %v1456_v60 }
 0x9df   :  { %1323 = vmax.xlane.f32.xlu0 %v1322_v9  ;;  %2007 = vmatprep.subr.mxu1 %v1455_v61 }
 0x9e0   :  { %2008 = vmatpush3.msra.mxu1 %v1455_v61 }
 0xa60   :  { %v1195_v10 = vpop.xlane.xlu1 %1194  ;;  %v1192_v11 = vpop.xlane.xlu0 %1191 }
 0xa61   :  { %v1197_v12 = vsub.f32 %v1189_v62, %v1195_v10  ;;  %v1196_v15 = vsub.f32 %v1188_v63, %v1192_v11  ;;  %v1454_v63 = vld [vmem:[%s2594_s11 + $0x8] sm:$0xff] }
 0xa62   :  { %2009 = vmatprep.subr.mxu1 %v1454_v63 }
 0xa63   :  { %v1200_v16 = vmul.f32 1.442695, %v1197_v12  ;;  %v1198_v17 = vmul.f32 1.442695, %v1196_v15  ;;  %2010 = vmatpush3.msra.mxu1 %v1454_v63 }
 0xa64   :  { %v1321_v5 = vpop.xlane.xlu0 %1320  ;;  %2011 = vmatprep.subr.mxu1 %v1453_v14 }
 0xa65   :  { %2085 = vpow2.f32 %v1200_v16  ;;  %v1325_v18 = vsub.f32 %v1317_v59, %v1321_v5  ;;  %2012 = vmatpush3.msra.mxu1 %v1453_v14  ;;  %v2186_v59 = vmov 32  }
 0xa66   :  { %2087 = vpow2.f32 %v1198_v17  ;;  %2052 = vset.pattern.permute.xlu1 %v2186_v59  ;;  %2051 = vset.pattern.permute.xlu0 %v2186_v59 }
 0xa67   :  { %v1327_v19 = vmul.f32 1.442695, %v1325_v18 }
 0xa68   :  { %v1324_v20 = vpop.xlane.xlu0 %1323 }
 0xa69   :  { %2089 = vpow2.f32 %v1327_v19  ;;  %v1326_v21 = vsub.f32 %v1318_v8, %v1324_v20  ;;  %v1542_v19 = vld [vmem:[%s2595_s12] sm:$0x1] }
 0xa6b   :  { %v1329_v6 = vmul.f32 1.442695, %v1326_v21 }
 0xa6d   :  { %2091 = vpow2.f32 %v1329_v6 }
 0xa72   :  { %v2086_v22 = vpop.eup %2085 }
 0xa73   :  { %v2088_v24 = vpop.eup %2087  ;;  %v1205_v25 = vsel %vm80_vm8, %v2086_v22, 0.0 }
 0xa74   :  { %1206 = vadd.xlane.f32.xlu0 %v1205_v25  ;;  %v1202_v26 = vsel %vm80_vm8, %v2088_v24, 0.0 }
 0xa75   :  { %1203 = vadd.xlane.f32.xlu1 %v1202_v26 }
 0xa76   :  { %v2090_v27 = vpop.eup %2089 }
 0xa77   :  { %v1331_v30 = vsel %vm80_vm8, %v2090_v27, 0.0 }
 0xa79   :  { %1332 = vadd.xlane.f32.xlu1 %v1331_v30 }
 0xa7a   :  { %v2092_v31 = vpop.eup %2091 }
 0xa7b   :  { %v1334_v32 = vsel %vm80_vm8, %v2092_v31, 0.0 }
 0xa7c   :  { %1335 = vadd.xlane.f32.xlu0 %v1334_v32 }
 0xa8a   :  { %1347 = vrot.lane.b32.xlu1 %v2470_v40, %s2184_s3 }
 0xa92   :  { %1345 = vrot.lane.b32.xlu0 %v2475_v41, %s2184_s3 }
 0xafd   :  { %v1207_v33 = vpop.xlane.xlu0 %1206 }
 0xafe   :  { %v1204_v34 = vpop.xlane.xlu1 %1203  ;;  %v1209_v35 = vmax.f32 %v1207_v33, 1e-30 }
 0xaff   :  { %v1208_v36 = vmax.f32 %v1204_v34, 1e-30 }
 0xb00   :  { %2093 = vrcp.f32 %v1209_v35 }
 0xb01   :  { %2095 = vrcp.f32 %v1208_v36 }
 0xb02   :  { %v1333_v37 = vpop.xlane.xlu1 %1332 }
 0xb03   :  { %v1337_v38 = vmax.f32 %v1333_v37, 1e-30 }
 0xb05   :  { %2097 = vrcp.f32 %v1337_v38  ;;  %v1336_v39 = vpop.xlane.xlu0 %1335 }
 0xb06   :  { %v1348_v42 = vpop.permute.xlu1 %1347  ;;  %v1338_v43 = vmax.f32 %v1336_v39, 1e-30 }
 0xb07   :  { %1990 = vmatprep.subr.mxu0 %v1348_v42 }
 0xb08   :  { %2099 = vrcp.f32 %v1338_v43 }
 0xb09   :  { %v1346_v50 = vpop.permute.xlu0 %1345 }
 0xb0d   :  { %v2094_v44 = vpop.eup %2093 }
 0xb0e   :  { %v2096_v45 = vpop.eup %2095  ;;  %v1213_v40 = vmul.f32 %v2094_v44, %v2334_v7 }
 0xb0f   :  { %v1212_v41 = vmul.f32 %v2096_v45, %v2337_v23 }
 0xb10   :  { %v1215_v46 = vmul.f32 %v2086_v22, %v1213_v40 }
 0xb11   :  { %v1214_v47 = vmul.f32 %v2088_v24, %v1212_v41 }
 0xb12   :  { %v2098_v4 = vpop.eup %2097 }
 0xb13   :  { %1987 = vmatprep.mubr.msk.f32.mxu0 %vm80_vm8, %v1214_v47  ;;  %v1341_v48 = vmul.f32 %v2098_v4, %v2337_v23 }
 0xb14   :  { %1988 = vmatmul.mubr.msk.f32.vlgmr.msra.gmra.mxu0 %vm80_vm8, %v1215_v46 }
 0xb15   :  { %v2100_v49 = vpop.eup %2099  ;;  %1991 = vmatpush3.msra.mxu0 %v1348_v42  ;;  %v1343_v51 = vmul.f32 %v2090_v27, %v1341_v48 }
 0xb16   :  { %1992 = vmatprep.subr.mxu0 %v1346_v50  ;;  %v1342_v52 = vmul.f32 %v2100_v49, %v2334_v7 }
 0xb17   :  { %1993 = vmatpush3.msra.mxu0 %v1346_v50  ;;  %1994 = vmatprep.mubr.msk.f32.mxu0 %vm80_vm8, %v1343_v51 }
 0xb18   :  { %v1344_v53 = vmul.f32 %v2092_v31, %v1342_v52  ;;  %2016 = vmatprep.subr.mxu0 %v2179_v3  ;;  %v1815_v52 = vld [vmem:[%s2596_s13] ss:$0 sm:$0xff] }
 0xb1a   :  { %1995 = vmatmul.mubr.msk.f32.vlgmr.msra.gmra.mxu0 %vm80_vm8, %v1344_v53 }
 0xb1b   :  { %2020 = vmatprep.mubr.msk.f32.mxu0 %vm2182_vm1, %v2179_v3 }
 0xbd4   :  { %v1989_v62 = vpop.f32.mrf.mxu0 }
 0xbd6   :  { %v1288_v0 = vpop.f32.mrf.mxu0 }
 0xbda   :  { %v1996_v1 = vpop.f32.mrf.mxu0 }
 0xbdc   :  { %v1423_v58 = vpop.f32.mrf.mxu0 }
 0xbdd   :  { %1434 = vrot.lane.b32.xlu1 %v1423_v58, %s2185_s2 }
 0xbe1   :  { %1436 = vrot.lane.b32.xlu1 %v1996_v1, %s2185_s2 }
 0xc4f   :  { %v1435_v8 = vpop.permute.xlu1 %1434 }
 0xc50   :  { %v1440_v9 = vsel %vm531_vm12, %v1288_v0, %v1435_v8 }
 0xc51   :  { %v1449_v10 = vadd.f32 %v1809_v2, %v1440_v9 }
 0xc53   :  { %v1451_v11 = vmax.f32 %v1449_v10, 0.0  ;;  %v1437_v12 = vpop.permute.xlu1 %1436 }
 0xc54   :  { %v1441_v15 = vsel %vm531_vm12, %v1989_v62, %v1437_v12 }
 0xc55   :  { %v1450_v16 = vadd.f32 %v1809_v2, %v1441_v15  ;;  %2013 = vmatprep.mubr.msk.f32.mxu1 %vm179_vm2, %v1451_v11 }
 0xc57   :  { %v1452_v17 = vmax.f32 %v1450_v16, 0.0 }
 0xc59   :  { %2014 = vmatmul.mubr.msk.f32.vlgmr.msra.gmra.mxu1 %vm179_vm2, %v1452_v17 }
 0xd19   :  { %v2015_v5 = vpop.f32.mrf.mxu1 }
 0xd1a   :  { %1627 = vperm.xlu1 %2052, %v2015_v5   ;;  %2017 = vmatpush3.xpose.msk.msra.mxu0 %vm531_vm12, %v2015_v5 }
 0xd1b   :  { %v1533_v18 = vpop.f32.mrf.mxu1  ;;  %2018 = vmatprep.subr.mxu0 %v2179_v3 }
 0xd1c   :  { %1623 = vperm.xlu0 %2051, %v1533_v18  }
 0xd1e   :  { %2019 = vmatpush3.xpose.msk.msra.mxu0 %vm531_vm12, %v1533_v18 }
 0xd1f   :  { %2023 = vmatprep.subr.mxu0 %v2015_v5 }
 0xd21   :  { %2021 = vmatmul.mubr.msk.f32.vlgmr.msra.gmra.mxu0 %vm531_vm12, %v1542_v19 }
 0xd22   :  { %2024 = vmatpush3.msra.mxu0 %v2015_v5 }
 0xd23   :  { %2025 = vmatprep.subr.mxu0 %v1533_v18 }
 0xd24   :  { %2026 = vmatpush3.msra.mxu0 %v1533_v18 }
 0xd95   :  { %v1628_v21 = vpop.permute.xlu1 %1627 }
 0xd97   :  { %v1624_v22 = vpop.permute.xlu0 %1623 }
 0xde1   :  { %v1618_v20 = vpop.f32.mrf.mxu0 }
 0xde2   :  { %v1633_v6 = vrot.slane %v1618_v20, %v2305_v13 }
 0xde3   :  { %v2022_v24 = vpop.f32.mrf.mxu0 }
 0xde4   :  { %v1634_v3 = vadd.f32 %v1633_v6, %v1624_v22  ;;  %v1635_v25 = vadd.f32 %v1633_v6, %v1628_v21 }
 0xde6   :  { %v1638_v26 = vmul.f32 0.2, %v1634_v3  ;;  %v1639_v27 = vmul.f32 0.2, %v1635_v25  ;;  %vm1637_vm1 = vcmp.gt.f32.partialorder %v1635_v25, 0.0  ;;  %vm1636_vm2 = vcmp.gt.f32.partialorder %v1634_v3, 0.0 }
 0xde8   :  { %v1641_v30 = vsel %vm1637_vm1, %v1635_v25, %v1639_v27  ;;  %v1640_v31 = vsel %vm1636_vm2, %v1634_v3, %v1638_v26 }
 0xde9   :  { %v1643_v32 = vadd.f32 %v1641_v30, %v2311_v28  ;;  %v1642_v33 = vadd.f32 %v1640_v31, %v2313_v29 }
 0xdeb   :  { %v1647_v34 = vsel %vm80_vm8, %v1643_v32, -inf  ;;  %v1644_v35 = vsel %vm80_vm8, %v1642_v33, -inf }
 0xdec   :  { %1648 = vmax.xlane.f32.xlu0 %v1647_v34  ;;  %1645 = vmax.xlane.f32.xlu1 %v1644_v35 }
 0xe75   :  { %v1649_v13 = vpop.xlane.xlu0 %1648  ;;  %v1646_v36 = vpop.xlane.xlu1 %1645 }
 0xe76   :  { %v1651_v37 = vsub.f32 %v1643_v32, %v1649_v13  ;;  %v1650_v38 = vsub.f32 %v1642_v33, %v1646_v36 }
 0xe78   :  { %v1654_v39 = vmul.f32 1.442695, %v1651_v37  ;;  %v1652_v42 = vmul.f32 1.442695, %v1650_v38 }
 0xe7a   :  { %2101 = vpow2.f32 %v1654_v39 }
 0xe7b   :  { %2103 = vpow2.f32 %v1652_v42 }
 0xe87   :  { %v2102_v43 = vpop.eup %2101 }
 0xe88   :  { %v2104_v44 = vpop.eup %2103  ;;  %v1659_v28 = vsel %vm80_vm8, %v2102_v43, 0.0 }
 0xe89   :  { %1660 = vadd.xlane.f32.xlu1 %v1659_v28  ;;  %v1656_v29 = vsel %vm80_vm8, %v2104_v44, 0.0 }
 0xe8a   :  { %1657 = vadd.xlane.f32.xlu0 %v1656_v29 }
 0xf12   :  { %v1661_v45 = vpop.xlane.xlu1 %1660 }
 0xf13   :  { %v1658_v40 = vpop.xlane.xlu0 %1657  ;;  %v1663_v41 = vmax.f32 %v1661_v45, 1e-30 }
 0xf14   :  { %v1662_v46 = vmax.f32 %v1658_v40, 1e-30 }
 0xf15   :  { %2105 = vrcp.f32 %v1663_v41 }
 0xf16   :  { %2107 = vrcp.f32 %v1662_v46 }
 0xf22   :  { %v2106_v47 = vpop.eup %2105 }
 0xf23   :  { %v2108_v4 = vpop.eup %2107  ;;  %v1667_v48 = vmul.f32 %v2106_v47, %v2334_v7 }
 0xf24   :  { %v1666_v49 = vmul.f32 %v2108_v4, %v2337_v23 }
 0xf25   :  { %v1669_v50 = vmul.f32 %v2102_v43, %v1667_v48 }
 0xf26   :  { %v1668_v51 = vmul.f32 %v2104_v44, %v1666_v49 }
 0xf28   :  { %2027 = vmatprep.mubr.msk.f32.mxu0 %vm80_vm8, %v1668_v51 }
 0xf29   :  { %2028 = vmatmul.mubr.msk.f32.vlgmr.msra.gmra.mxu0 %vm80_vm8, %v1669_v50 }
 0xfe9   :  { %v2029_v53 = vpop.f32.mrf.mxu0 }
 0xfea   :  { %v1755_v54 = vadd.f32 %v2029_v53, %v1815_v52 }
 0xfeb   :  { %v1749_v55 = vpop.f32.mrf.mxu0 }
 0xfec   :  { %1759 = vst.msk [vmem:[#allocation7 + $0x8] sm:$0xff] %vm531_vm12, %v1755_v54  ;;  %v1750_v7 = vadd.f32 %v1815_v52, %v1749_v55 }
 0xfee   :  { %1758 = vst.msk [vmem:[#allocation7] sm:$0xff] %vm531_vm12, %v1750_v7 }
 0xfef   :  { %2160 = shalt.err (!%p2157_p0)
}
 0xff0   :  { %1771 = dma.vmem_to_hbm [thread:$0]  %s1766_s29, 256, %s2597_s14, [#allocation4], %s2176_s16, %s2176_s16, %s2177_s17  }
 0xff1   :  { %2173 = dma.done.wait [#allocation4], 256  }
 0xff2   :  { %2174 = vsyncadd [#allocation4], 4294967040 }
 0xff3   :  { %1775 = vsyncpa [#allocation3], 1 }
 0xff4   :  { %1776 = vsyncpa [#allocation6], 1 }
 0xff5   :  { %1777 = vsyncpa [#allocation4], 1 }

</bundles_post_ra>
